<compile_context>
chip_gen: v7x
topology: tpu7x:2x2x1
jax: 0.10.0
libtpu: 0.0.40
codegen_flags: <defaults>
</compile_context>

<pallas_src>
import functools

import numpy as np
import jax
import jax.numpy as jnp
from jax import lax
from jax.experimental import pallas as pl
from jax.experimental.pallas import tpu as pltpu

# ---- module "parameters" (from __init__), deterministic, in-script ----------
VOXEL_SIZE = (0.5, 0.5, 0.5)
POINT_CLOUD_RANGE = (0.0, 0.0, 0.0, 4.0, 4.0, 2.0)
MAX_NUM_POINTS = 5
MAX_VOXELS = 20                       # max_voxels_train == max_voxels_infer

_LOW = tuple(float(v) for v in POINT_CLOUD_RANGE[:3])
_INV_VS = tuple(1.0 / float(v) for v in VOXEL_SIZE)       # exact for 0.5
_GRID = tuple(int((POINT_CLOUD_RANGE[3 + i] - POINT_CLOUD_RANGE[i]) /
                  VOXEL_SIZE[i]) for i in range(3))        # .int() truncation


def _round_up(x, m):
    return ((x + m - 1) // m) * m


# -----------------------------------------------------------------------------
# Fused kernel: voxel key -> rank -> dense (sorted) voxel id -> one-hot scatter
# -----------------------------------------------------------------------------
def _make_kernel(npad, n_valid, max_num_points, max_voxels, mp_pad, mv_pad):
    gx, gy, gz = _GRID
    wx, wy = gy * gz, gz
    sent = gx * gy * gz                   # int32 sentinel, derived from grid

    def _stack_rows(rows, num_rows, width):
        """Place k (1, width) f32 rows into rows 0..k-1 of a (num_rows, width)."""
        sub = lax.broadcasted_iota(jnp.int32, (num_rows, 1), 0)
        out = jnp.zeros((num_rows, width), jnp.float32)
        for i, r in enumerate(rows):
            out = jnp.where(sub == i, r, out)
        return out

    def kernel(pts_t_ref, pts_c_ref, vox_ref, meta_ref):
        pts_t = pts_t_ref[...]                      # (ndim_pad, npad) f32 (row layout)
        pts_c = pts_c_ref[...]                      # (npad, 8)       f32 (col layout)

        lane = lax.broadcasted_iota(jnp.int32, (1, npad), 1)
        sub = lax.broadcasted_iota(jnp.int32, (npad, 1), 0)

        def key_of(x, y, z, idx):
            cx = jnp.floor((x - _LOW[0]) * _INV_VS[0])
            cy = jnp.floor((y - _LOW[1]) * _INV_VS[1])
            cz = jnp.floor((z - _LOW[2]) * _INV_VS[2])
            ok = ((cx >= 0.0) & (cx < float(gx)) &
                  (cy >= 0.0) & (cy < float(gy)) &
                  (cz >= 0.0) & (cz < float(gz)) & (idx < n_valid))
            key = jnp.where(ok,
                            cx.astype(jnp.int32) * wx +
                            cy.astype(jnp.int32) * wy +
                            cz.astype(jnp.int32),
                            sent)                   # int32 key, exact for any grid
            return key, ok, cx, cy, cz

        # row- and column-oriented keys computed independently (bit-identical),
        # so no O(npad^2) broadcast+transpose is needed for the key.
        key_row, valid_row, cx_r, cy_r, cz_r = key_of(
            pts_t[0:1, :], pts_t[1:2, :], pts_t[2:3, :], lane)   # (1, npad)
        key_col, _, _, _, _ = key_of(
            pts_c[:, 0:1], pts_c[:, 1:2], pts_c[:, 2:3], sub)    # (npad, 1)

        # ---- pairwise dedup, row-oriented reductions only --------------------
        same = key_col == key_row                               # (npad, npad)
        rank_row = jnp.sum((same & (sub < lane)).astype(jnp.int32),
                           axis=0, keepdims=True)               # (1, npad)
        first_row = valid_row & (rank_row == 0)                 # first pt of voxel

        # dense sorted voxel id (torch.unique dim=0 inverse), lane-axis reduce
        # offloaded to the MXU: dr[c] = #(first points with smaller key).
        less_f = (key_col < key_row).astype(jnp.float32)        # (npad, npad)
        first8 = _stack_rows([first_row.astype(jnp.float32)], 8, npad)
        dr_row_f = jnp.dot(first8, less_f,
                           preferred_element_type=jnp.float32)[0:1, :]  # (1, npad)

        # explicit max_voxels clamp (voxels beyond the cap are dropped)
        in_vox = valid_row & (dr_row_f < float(max_voxels))
        placed_row = in_vox & (rank_row < max_num_points)
        firstg_row = in_vox & (rank_row == 0)

        slotmask_row = jnp.where(
            placed_row,
            dr_row_f * float(max_num_points) + rank_row.astype(jnp.float32),
            -1.0)                                               # (1, npad) f32

        # ---- single cheap relayout: [slotmask, dr] rows -> columns -----------
        sub128 = lax.broadcasted_iota(jnp.int32, (128, 1), 0)
        pack = jnp.where(sub128 == 1, dr_row_f, slotmask_row)   # (128, npad)
        cols = jnp.transpose(pack)                              # (npad, 128)
        slot_col = jnp.floor(cols[:, 0:1] + 0.5).astype(jnp.int32)  # -1 = drop
        dr_col = jnp.floor(cols[:, 1:2] + 0.5).astype(jnp.int32)

        # ---- one-hot scatter: features filled by one lane-dense MXU dot ------
        s_i = lax.broadcasted_iota(jnp.int32, (1, mp_pad), 1)
        sel_t = (slot_col == s_i).astype(jnp.float32)           # (npad, mp_pad)
        vox_ref[...] = jnp.dot(pts_t, sel_t,
                               preferred_element_type=jnp.float32)

        # ---- per-voxel metadata in one more MXU contraction -------------------
        # rows: 0 = count, 1..3 = (ix, iy, iz), 4 = present, 5..7 = 0
        v_i = lax.broadcasted_iota(jnp.int32, (1, mv_pad), 1)
        onehot = (dr_col == v_i).astype(jnp.float32)            # (npad, mv_pad)
        fgf = firstg_row.astype(jnp.float32)
        lhs2 = _stack_rows([placed_row.astype(jnp.float32),
                            fgf * cx_r, fgf * cy_r, fgf * cz_r, fgf], 8, npad)
        meta_f = jnp.dot(lhs2, onehot, preferred_element_type=jnp.float32)
        meta_ref[...] = jnp.floor(meta_f + 0.5).astype(jnp.int32)

    return kernel


# -----------------------------------------------------------------------------
# Device-side wrapper (single jit, single pallas_call, scalar-only host sync)
# -----------------------------------------------------------------------------
@functools.partial(jax.jit, static_argnames=("max_voxels",))
def _voxelize_device(points, *, max_voxels):
    n, ndim = points.shape
    npad = _round_up(max(n, 1), 128)
    ndim_pad = _round_up(ndim, 8)
    mp = max_voxels * MAX_NUM_POINTS
    mp_pad = _round_up(mp, 128)
    mv_pad = _round_up(max_voxels, 128)

    ptsf = points.astype(jnp.float32)
    # row layout: point index on the 128-lane axis (MXU LHS, lane-dense output)
    pts_t = jnp.zeros((ndim_pad, npad), jnp.float32).at[:ndim, :n].set(ptsf.T)
    # tiny column-layout xyz copy: gives the sublane-oriented key for free
    pts_c = jnp.zeros((npad, 8), jnp.float32).at[:n, :3].set(ptsf[:, :3])

    vmem = pl.BlockSpec(memory_space=pltpu.MemorySpace.VMEM)
    vox_t, meta = pl.pallas_call(
        _make_kernel(npad, n, MAX_NUM_POINTS, max_voxels, mp_pad, mv_pad),
        out_shape=(jax.ShapeDtypeStruct((ndim_pad, mp_pad), jnp.float32),
                   jax.ShapeDtypeStruct((8, mv_pad), jnp.int32)),
        in_specs=[vmem, vmem],
        out_specs=(vmem, vmem),
    )(pts_t, pts_c)

    voxels_full = vox_t[:ndim, :mp].T.reshape(max_voxels, MAX_NUM_POINTS, ndim)
    counts_full = meta[0, :max_voxels]
    coords_full = meta[1:4, :max_voxels].T            # (max_voxels, 3) int32
    num_voxels = jnp.sum(meta[4, :])                  # scalar int32 (on device)
    return voxels_full, coords_full, counts_full, num_voxels


# -----------------------------------------------------------------------------
# Forward pass (matches HardVoxelization.forward; torch.unique sorted order)
# -----------------------------------------------------------------------------
def hard_voxelization(points, is_training=True):
    del is_training                      # max_voxels_train == max_voxels_infer
    points = jnp.asarray(points, jnp.float32)
    voxels_f, coords_f, counts_f, nv = _voxelize_device(points,
                                                        max_voxels=MAX_VOXELS)
    # Only host sync: one int32 scalar, needed because the module's outputs
    # have a data-dependent leading dimension (num_voxels).
    num_voxels = int(jax.device_get(nv))
    return voxels_f[:num_voxels], coords_f[:num_voxels], counts_f[:num_voxels]


# -----------------------------------------------------------------------------
if __name__ == "__main__":
    key = jax.random.PRNGKey(0)
    k1, k2 = jax.random.split(key)
    n = 64
    xyz = jax.random.uniform(
        k1, (n, 3), jnp.float32,
        minval=jnp.array([-0.5, -0.5, -0.5], jnp.float32),
        maxval=jnp.array([4.5, 4.5, 2.5], jnp.float32))
    feat = jax.random.uniform(k2, (n, 1), jnp.float32)
    points = jnp.concatenate([xyz, feat], axis=1)            # (N, 3 + C), C = 1

    voxels, coordinates, num_points = hard_voxelization(points)
    jax.block_until_ready((voxels, coordinates, num_points))

    # ---- independent numpy reference replicating the torch module -----------
    pts_np = np.asarray(jax.device_get(points), np.float32)
    low = np.asarray(POINT_CLOUD_RANGE[:3], np.float32)
    high = np.asarray(POINT_CLOUD_RANGE[3:], np.float32)
    vs = np.asarray(VOXEL_SIZE, np.float32)
    grid = ((high - low) / vs).astype(np.int32)
    vi = np.floor((pts_np[:, :3] - low) / vs).astype(np.int32)
    mask = ((vi >= 0) & (vi < grid)).all(axis=1)
    pts_f, vi_f = pts_np[mask], vi[mask]
    unique, inverse = np.unique(vi_f, axis=0, return_inverse=True)
    inverse = np.asarray(inverse).reshape(-1)
    num_voxels_ref = int(min(unique.shape[0], MAX_VOXELS))
    ndim = pts_np.shape[1]
    vox_ref = np.zeros((num_voxels_ref, MAX_NUM_POINTS, ndim), np.float32)
    cnt_ref = np.zeros((num_voxels_ref,), np.int32)
    for i in range(pts_f.shape[0]):
        idx = int(inverse[i])
        if idx < num_voxels_ref and cnt_ref[idx] < MAX_NUM_POINTS:
            vox_ref[idx, cnt_ref[idx]] = pts_f[i]
            cnt_ref[idx] += 1
    coord_ref = unique[:num_voxels_ref].astype(np.int32)

    voxels_np = np.asarray(jax.device_get(voxels))
    assert voxels_np.shape == (num_voxels_ref, MAX_NUM_POINTS, ndim), voxels_np.shape
    assert np.allclose(voxels_np, vox_ref, atol=0.0)
    assert np.array_equal(np.asarray(jax.device_get(coordinates)), coord_ref)
    assert np.array_equal(np.asarray(jax.device_get(num_points)), cnt_ref)

    print("KERNEL_OK")
</pallas_src>

<mosaic_0001>
module attributes {stable_mosaic.version = 11 : i64} {
  func.func @kernel(%arg0: memref<8x128xf32, #tpu.memory_space<vmem>>, %arg1: memref<128x8xf32, #tpu.memory_space<vmem>>, %arg2: memref<8x128xf32, #tpu.memory_space<vmem>>, %arg3: memref<8x128xi32, #tpu.memory_space<vmem>>) attributes {dimension_semantics = [], scalar_prefetch = 0 : i64, scratch_operands = 0 : i64, tpu.core_type = #tpu.core_type<tc>} {
    %c0 = arith.constant 0 : index
    %c0_0 = arith.constant 0 : index
    %0 = vector.load %arg0[%c0, %c0_0] : memref<8x128xf32, #tpu.memory_space<vmem>>, vector<8x128xf32>
    %c0_1 = arith.constant 0 : index
    %c0_2 = arith.constant 0 : index
    %1 = vector.load %arg1[%c0_1, %c0_2] : memref<128x8xf32, #tpu.memory_space<vmem>>, vector<128x8xf32>
    %2 = tpu.iota {dimensions = array<i32: 1>} : vector<1x128xi32>
    %3 = tpu.iota {dimensions = array<i32: 0>} : vector<128x1xi32>
    %4 = vector.extract_strided_slice %0 {offsets = [0, 0], sizes = [1, 128], strides = [1, 1]} : vector<8x128xf32> to vector<1x128xf32>
    %5 = vector.extract_strided_slice %0 {offsets = [1, 0], sizes = [1, 128], strides = [1, 1]} : vector<8x128xf32> to vector<1x128xf32>
    %6 = vector.extract_strided_slice %0 {offsets = [2, 0], sizes = [1, 128], strides = [1, 1]} : vector<8x128xf32> to vector<1x128xf32>
    %cst = arith.constant 0.000000e+00 : f32
    %7 = vector.broadcast %cst : f32 to vector<1x128xf32>
    %8 = arith.subf %4, %7 : vector<1x128xf32>
    %cst_3 = arith.constant 2.000000e+00 : f32
    %9 = vector.broadcast %cst_3 : f32 to vector<1x128xf32>
    %10 = arith.mulf %8, %9 : vector<1x128xf32>
    %11 = math.floor %10 : vector<1x128xf32>
    %cst_4 = arith.constant 0.000000e+00 : f32
    %12 = vector.broadcast %cst_4 : f32 to vector<1x128xf32>
    %13 = arith.subf %5, %12 : vector<1x128xf32>
    %cst_5 = arith.constant 2.000000e+00 : f32
    %14 = vector.broadcast %cst_5 : f32 to vector<1x128xf32>
    %15 = arith.mulf %13, %14 : vector<1x128xf32>
    %16 = math.floor %15 : vector<1x128xf32>
    %cst_6 = arith.constant 0.000000e+00 : f32
    %17 = vector.broadcast %cst_6 : f32 to vector<1x128xf32>
    %18 = arith.subf %6, %17 : vector<1x128xf32>
    %cst_7 = arith.constant 2.000000e+00 : f32
    %19 = vector.broadcast %cst_7 : f32 to vector<1x128xf32>
    %20 = arith.mulf %18, %19 : vector<1x128xf32>
    %21 = math.floor %20 : vector<1x128xf32>
    %cst_8 = arith.constant 0.000000e+00 : f32
    %22 = vector.broadcast %cst_8 : f32 to vector<1x128xf32>
    %23 = arith.cmpf oge, %11, %22 : vector<1x128xf32>
    %cst_9 = arith.constant 8.000000e+00 : f32
    %24 = vector.broadcast %cst_9 : f32 to vector<1x128xf32>
    %25 = arith.cmpf olt, %11, %24 : vector<1x128xf32>
    %26 = arith.andi %23, %25 : vector<1x128xi1>
    %cst_10 = arith.constant 0.000000e+00 : f32
    %27 = vector.broadcast %cst_10 : f32 to vector<1x128xf32>
    %28 = arith.cmpf oge, %16, %27 : vector<1x128xf32>
    %29 = arith.andi %26, %28 : vector<1x128xi1>
    %cst_11 = arith.constant 8.000000e+00 : f32
    %30 = vector.broadcast %cst_11 : f32 to vector<1x128xf32>
    %31 = arith.cmpf olt, %16, %30 : vector<1x128xf32>
    %32 = arith.andi %29, %31 : vector<1x128xi1>
    %cst_12 = arith.constant 0.000000e+00 : f32
    %33 = vector.broadcast %cst_12 : f32 to vector<1x128xf32>
    %34 = arith.cmpf oge, %21, %33 : vector<1x128xf32>
    %35 = arith.andi %32, %34 : vector<1x128xi1>
    %cst_13 = arith.constant 4.000000e+00 : f32
    %36 = vector.broadcast %cst_13 : f32 to vector<1x128xf32>
    %37 = arith.cmpf olt, %21, %36 : vector<1x128xf32>
    %38 = arith.andi %35, %37 : vector<1x128xi1>
    %c64_i32 = arith.constant 64 : i32
    %39 = vector.broadcast %c64_i32 : i32 to vector<1x128xi32>
    %40 = arith.cmpi slt, %2, %39 : vector<1x128xi32>
    %41 = arith.andi %38, %40 : vector<1x128xi1>
    %42 = arith.fptosi %11 : vector<1x128xf32> to vector<1x128xi32>
    %c32_i32 = arith.constant 32 : i32
    %43 = vector.broadcast %c32_i32 : i32 to vector<1x128xi32>
    %44 = arith.muli %42, %43 : vector<1x128xi32>
    %45 = arith.fptosi %16 : vector<1x128xf32> to vector<1x128xi32>
    %c4_i32 = arith.constant 4 : i32
    %46 = vector.broadcast %c4_i32 : i32 to vector<1x128xi32>
    %47 = arith.muli %45, %46 : vector<1x128xi32>
    %48 = arith.addi %44, %47 : vector<1x128xi32>
    %49 = arith.fptosi %21 : vector<1x128xf32> to vector<1x128xi32>
    %50 = arith.addi %48, %49 : vector<1x128xi32>
    %c256_i32 = arith.constant 256 : i32
    %51 = vector.broadcast %c256_i32 : i32 to vector<1x128xi32>
    %52 = arith.select %41, %50, %51 : vector<1x128xi1>, vector<1x128xi32>
    %53 = vector.extract_strided_slice %1 {offsets = [0, 0], sizes = [128, 1], strides = [1, 1]} : vector<128x8xf32> to vector<128x1xf32>
    %54 = vector.extract_strided_slice %1 {offsets = [0, 1], sizes = [128, 1], strides = [1, 1]} : vector<128x8xf32> to vector<128x1xf32>
    %55 = vector.extract_strided_slice %1 {offsets = [0, 2], sizes = [128, 1], strides = [1, 1]} : vector<128x8xf32> to vector<128x1xf32>
    %cst_14 = arith.constant 0.000000e+00 : f32
    %56 = vector.broadcast %cst_14 : f32 to vector<128x1xf32>
    %57 = arith.subf %53, %56 : vector<128x1xf32>
    %cst_15 = arith.constant 2.000000e+00 : f32
    %58 = vector.broadcast %cst_15 : f32 to vector<128x1xf32>
    %59 = arith.mulf %57, %58 : vector<128x1xf32>
    %60 = math.floor %59 : vector<128x1xf32>
    %cst_16 = arith.constant 0.000000e+00 : f32
    %61 = vector.broadcast %cst_16 : f32 to vector<128x1xf32>
    %62 = arith.subf %54, %61 : vector<128x1xf32>
    %cst_17 = arith.constant 2.000000e+00 : f32
    %63 = vector.broadcast %cst_17 : f32 to vector<128x1xf32>
    %64 = arith.mulf %62, %63 : vector<128x1xf32>
    %65 = math.floor %64 : vector<128x1xf32>
    %cst_18 = arith.constant 0.000000e+00 : f32
    %66 = vector.broadcast %cst_18 : f32 to vector<128x1xf32>
    %67 = arith.subf %55, %66 : vector<128x1xf32>
    %cst_19 = arith.constant 2.000000e+00 : f32
    %68 = vector.broadcast %cst_19 : f32 to vector<128x1xf32>
    %69 = arith.mulf %67, %68 : vector<128x1xf32>
    %70 = math.floor %69 : vector<128x1xf32>
    %cst_20 = arith.constant 0.000000e+00 : f32
    %71 = vector.broadcast %cst_20 : f32 to vector<128x1xf32>
    %72 = arith.cmpf oge, %60, %71 : vector<128x1xf32>
    %cst_21 = arith.constant 8.000000e+00 : f32
    %73 = vector.broadcast %cst_21 : f32 to vector<128x1xf32>
    %74 = arith.cmpf olt, %60, %73 : vector<128x1xf32>
    %75 = arith.andi %72, %74 : vector<128x1xi1>
    %cst_22 = arith.constant 0.000000e+00 : f32
    %76 = vector.broadcast %cst_22 : f32 to vector<128x1xf32>
    %77 = arith.cmpf oge, %65, %76 : vector<128x1xf32>
    %78 = arith.andi %75, %77 : vector<128x1xi1>
    %cst_23 = arith.constant 8.000000e+00 : f32
    %79 = vector.broadcast %cst_23 : f32 to vector<128x1xf32>
    %80 = arith.cmpf olt, %65, %79 : vector<128x1xf32>
    %81 = arith.andi %78, %80 : vector<128x1xi1>
    %cst_24 = arith.constant 0.000000e+00 : f32
    %82 = vector.broadcast %cst_24 : f32 to vector<128x1xf32>
    %83 = arith.cmpf oge, %70, %82 : vector<128x1xf32>
    %84 = arith.andi %81, %83 : vector<128x1xi1>
    %cst_25 = arith.constant 4.000000e+00 : f32
    %85 = vector.broadcast %cst_25 : f32 to vector<128x1xf32>
    %86 = arith.cmpf olt, %70, %85 : vector<128x1xf32>
    %87 = arith.andi %84, %86 : vector<128x1xi1>
    %c64_i32_26 = arith.constant 64 : i32
    %88 = vector.broadcast %c64_i32_26 : i32 to vector<128x1xi32>
    %89 = arith.cmpi slt, %3, %88 : vector<128x1xi32>
    %90 = arith.andi %87, %89 : vector<128x1xi1>
    %91 = arith.fptosi %60 : vector<128x1xf32> to vector<128x1xi32>
    %c32_i32_27 = arith.constant 32 : i32
    %92 = vector.broadcast %c32_i32_27 : i32 to vector<128x1xi32>
    %93 = arith.muli %91, %92 : vector<128x1xi32>
    %94 = arith.fptosi %65 : vector<128x1xf32> to vector<128x1xi32>
    %c4_i32_28 = arith.constant 4 : i32
    %95 = vector.broadcast %c4_i32_28 : i32 to vector<128x1xi32>
    %96 = arith.muli %94, %95 : vector<128x1xi32>
    %97 = arith.addi %93, %96 : vector<128x1xi32>
    %98 = arith.fptosi %70 : vector<128x1xf32> to vector<128x1xi32>
    %99 = arith.addi %97, %98 : vector<128x1xi32>
    %c256_i32_29 = arith.constant 256 : i32
    %100 = vector.broadcast %c256_i32_29 : i32 to vector<128x1xi32>
    %101 = arith.select %90, %99, %100 : vector<128x1xi1>, vector<128x1xi32>
    %102 = vector.broadcast %101 : vector<128x1xi32> to vector<128x128xi32>
    %103 = vector.broadcast %52 : vector<1x128xi32> to vector<128x128xi32>
    %104 = arith.cmpi eq, %102, %103 : vector<128x128xi32>
    %105 = vector.broadcast %3 : vector<128x1xi32> to vector<128x128xi32>
    %106 = vector.broadcast %2 : vector<1x128xi32> to vector<128x128xi32>
    %107 = arith.cmpi slt, %105, %106 : vector<128x128xi32>
    %108 = arith.andi %104, %107 : vector<128x128xi1>
    %109 = arith.extui %108 : vector<128x128xi1> to vector<128x128xi32>
    %cst_30 = arith.constant dense<0> : vector<128xi32>
    %110 = vector.multi_reduction <add>, %109, %cst_30 [0] : vector<128x128xi32> to vector<128xi32>
    %111 = vector.shape_cast %110 : vector<128xi32> to vector<1x128xi32>
    %c0_i32 = arith.constant 0 : i32
    %112 = vector.broadcast %c0_i32 : i32 to vector<1x128xi32>
    %113 = arith.cmpi eq, %111, %112 : vector<1x128xi32>
    %114 = arith.andi %41, %113 : vector<1x128xi1>
    %115 = vector.broadcast %101 : vector<128x1xi32> to vector<128x128xi32>
    %116 = vector.broadcast %52 : vector<1x128xi32> to vector<128x128xi32>
    %117 = arith.cmpi slt, %115, %116 : vector<128x128xi32>
    %118 = arith.extui %117 : vector<128x128xi1> to vector<128x128xi32>
    %119 = arith.sitofp %118 : vector<128x128xi32> to vector<128x128xf32>
    %120 = arith.extui %114 : vector<1x128xi1> to vector<1x128xi32>
    %121 = arith.sitofp %120 : vector<1x128xi32> to vector<1x128xf32>
    %122 = tpu.iota {dimensions = array<i32: 0>} : vector<8x1xi32>
    %cst_31 = arith.constant 0.000000e+00 : f32
    %123 = vector.broadcast %cst_31 : f32 to vector<8x128xf32>
    %c0_i32_32 = arith.constant 0 : i32
    %124 = vector.broadcast %c0_i32_32 : i32 to vector<8x1xi32>
    %125 = arith.cmpi eq, %122, %124 : vector<8x1xi32>
    %126 = vector.shape_cast %125 : vector<8x1xi1> to vector<8x1xi1>
    %127 = vector.broadcast %126 : vector<8x1xi1> to vector<8x128xi1>
    %128 = vector.shape_cast %121 : vector<1x128xf32> to vector<1x128xf32>
    %129 = vector.broadcast %128 : vector<1x128xf32> to vector<8x128xf32>
    %130 = arith.select %127, %129, %123 : vector<8x128xi1>, vector<8x128xf32>
    %cst_33 = arith.constant dense<0.000000e+00> : vector<8x128xf32>
    %131 = tpu.matmul %130, %119, %cst_33 {dimension_numbers = #tpu.dot_dimension_numbers<[1], [0], [0], [1], [0, 0, 1, 1], [], []>} : vector<8x128xf32>, vector<128x128xf32>, vector<8x128xf32> -> vector<8x128xf32>
    %132 = vector.extract_strided_slice %131 {offsets = [0, 0], sizes = [1, 128], strides = [1, 1]} : vector<8x128xf32> to vector<1x128xf32>
    %cst_34 = arith.constant 2.000000e+01 : f32
    %133 = vector.broadcast %cst_34 : f32 to vector<1x128xf32>
    %134 = arith.cmpf olt, %132, %133 : vector<1x128xf32>
    %135 = arith.andi %41, %134 : vector<1x128xi1>
    %c5_i32 = arith.constant 5 : i32
    %136 = vector.broadcast %c5_i32 : i32 to vector<1x128xi32>
    %137 = arith.cmpi slt, %111, %136 : vector<1x128xi32>
    %138 = arith.andi %135, %137 : vector<1x128xi1>
    %c0_i32_35 = arith.constant 0 : i32
    %139 = vector.broadcast %c0_i32_35 : i32 to vector<1x128xi32>
    %140 = arith.cmpi eq, %111, %139 : vector<1x128xi32>
    %141 = arith.andi %135, %140 : vector<1x128xi1>
    %cst_36 = arith.constant 5.000000e+00 : f32
    %142 = vector.broadcast %cst_36 : f32 to vector<1x128xf32>
    %143 = arith.mulf %132, %142 : vector<1x128xf32>
    %144 = arith.sitofp %111 : vector<1x128xi32> to vector<1x128xf32>
    %145 = arith.addf %143, %144 : vector<1x128xf32>
    %cst_37 = arith.constant -1.000000e+00 : f32
    %146 = vector.broadcast %cst_37 : f32 to vector<1x128xf32>
    %147 = arith.select %138, %145, %146 : vector<1x128xi1>, vector<1x128xf32>
    %148 = tpu.iota {dimensions = array<i32: 0>} : vector<128x1xi32>
    %c1_i32 = arith.constant 1 : i32
    %149 = vector.broadcast %c1_i32 : i32 to vector<128x1xi32>
    %150 = arith.cmpi eq, %148, %149 : vector<128x1xi32>
    %151 = vector.shape_cast %150 : vector<128x1xi1> to vector<128x1xi1>
    %152 = vector.broadcast %151 : vector<128x1xi1> to vector<128x128xi1>
    %153 = vector.shape_cast %132 : vector<1x128xf32> to vector<1x128xf32>
    %154 = vector.broadcast %153 : vector<1x128xf32> to vector<128x128xf32>
    %155 = vector.shape_cast %147 : vector<1x128xf32> to vector<1x128xf32>
    %156 = vector.broadcast %155 : vector<1x128xf32> to vector<128x128xf32>
    %157 = arith.select %152, %154, %156 : vector<128x128xi1>, vector<128x128xf32>
    %158 = tpu.transpose %157, [1, 0] : vector<128x128xf32> -> vector<128x128xf32>
    %159 = vector.extract_strided_slice %158 {offsets = [0, 0], sizes = [128, 1], strides = [1, 1]} : vector<128x128xf32> to vector<128x1xf32>
    %cst_38 = arith.constant 5.000000e-01 : f32
    %160 = vector.broadcast %cst_38 : f32 to vector<128x1xf32>
    %161 = arith.addf %159, %160 : vector<128x1xf32>
    %162 = math.floor %161 : vector<128x1xf32>
    %163 = arith.fptosi %162 : vector<128x1xf32> to vector<128x1xi32>
    %164 = vector.extract_strided_slice %158 {offsets = [0, 1], sizes = [128, 1], strides = [1, 1]} : vector<128x128xf32> to vector<128x1xf32>
    %cst_39 = arith.constant 5.000000e-01 : f32
    %165 = vector.broadcast %cst_39 : f32 to vector<128x1xf32>
    %166 = arith.addf %164, %165 : vector<128x1xf32>
    %167 = math.floor %166 : vector<128x1xf32>
    %168 = arith.fptosi %167 : vector<128x1xf32> to vector<128x1xi32>
    %169 = tpu.iota {dimensions = array<i32: 1>} : vector<1x128xi32>
    %170 = vector.broadcast %163 : vector<128x1xi32> to vector<128x128xi32>
    %171 = vector.broadcast %169 : vector<1x128xi32> to vector<128x128xi32>
    %172 = arith.cmpi eq, %170, %171 : vector<128x128xi32>
    %173 = arith.extui %172 : vector<128x128xi1> to vector<128x128xi32>
    %174 = arith.sitofp %173 : vector<128x128xi32> to vector<128x128xf32>
    %cst_40 = arith.constant dense<0.000000e+00> : vector<8x128xf32>
    %175 = tpu.matmul %0, %174, %cst_40 {dimension_numbers = #tpu.dot_dimension_numbers<[1], [0], [0], [1], [0, 0, 1, 1], [], []>} : vector<8x128xf32>, vector<128x128xf32>, vector<8x128xf32> -> vector<8x128xf32>
    %c0_41 = arith.constant 0 : index
    %c0_42 = arith.constant 0 : index
    %176 = vector.load %arg2[%c0_41, %c0_42] : memref<8x128xf32, #tpu.memory_space<vmem>>, vector<8x128xf32>
    tpu.vector_store %arg2[%c0_41, %c0_42], %175 {strides = array<i32>} : memref<8x128xf32, #tpu.memory_space<vmem>>, vector<8x128xf32>,
    %177 = tpu.iota {dimensions = array<i32: 1>} : vector<1x128xi32>
    %178 = vector.broadcast %168 : vector<128x1xi32> to vector<128x128xi32>
    %179 = vector.broadcast %177 : vector<1x128xi32> to vector<128x128xi32>
    %180 = arith.cmpi eq, %178, %179 : vector<128x128xi32>
    %181 = arith.extui %180 : vector<128x128xi1> to vector<128x128xi32>
    %182 = arith.sitofp %181 : vector<128x128xi32> to vector<128x128xf32>
    %183 = arith.extui %141 : vector<1x128xi1> to vector<1x128xi32>
    %184 = arith.sitofp %183 : vector<1x128xi32> to vector<1x128xf32>
    %185 = arith.extui %138 : vector<1x128xi1> to vector<1x128xi32>
    %186 = arith.sitofp %185 : vector<1x128xi32> to vector<1x128xf32>
    %187 = arith.mulf %184, %11 : vector<1x128xf32>
    %188 = arith.mulf %184, %16 : vector<1x128xf32>
    %189 = arith.mulf %184, %21 : vector<1x128xf32>
    %190 = tpu.iota {dimensions = array<i32: 0>} : vector<8x1xi32>
    %cst_43 = arith.constant 0.000000e+00 : f32
    %191 = vector.broadcast %cst_43 : f32 to vector<8x128xf32>
    %c0_i32_44 = arith.constant 0 : i32
    %192 = vector.broadcast %c0_i32_44 : i32 to vector<8x1xi32>
    %193 = arith.cmpi eq, %190, %192 : vector<8x1xi32>
    %194 = vector.shape_cast %193 : vector<8x1xi1> to vector<8x1xi1>
    %195 = vector.broadcast %194 : vector<8x1xi1> to vector<8x128xi1>
    %196 = vector.shape_cast %186 : vector<1x128xf32> to vector<1x128xf32>
    %197 = vector.broadcast %196 : vector<1x128xf32> to vector<8x128xf32>
    %198 = arith.select %195, %197, %191 : vector<8x128xi1>, vector<8x128xf32>
    %c1_i32_45 = arith.constant 1 : i32
    %199 = vector.broadcast %c1_i32_45 : i32 to vector<8x1xi32>
    %200 = arith.cmpi eq, %190, %199 : vector<8x1xi32>
    %201 = vector.shape_cast %200 : vector<8x1xi1> to vector<8x1xi1>
    %202 = vector.broadcast %201 : vector<8x1xi1> to vector<8x128xi1>
    %203 = vector.shape_cast %187 : vector<1x128xf32> to vector<1x128xf32>
    %204 = vector.broadcast %203 : vector<1x128xf32> to vector<8x128xf32>
    %205 = arith.select %202, %204, %198 : vector<8x128xi1>, vector<8x128xf32>
    %c2_i32 = arith.constant 2 : i32
    %206 = vector.broadcast %c2_i32 : i32 to vector<8x1xi32>
    %207 = arith.cmpi eq, %190, %206 : vector<8x1xi32>
    %208 = vector.shape_cast %207 : vector<8x1xi1> to vector<8x1xi1>
    %209 = vector.broadcast %208 : vector<8x1xi1> to vector<8x128xi1>
    %210 = vector.shape_cast %188 : vector<1x128xf32> to vector<1x128xf32>
    %211 = vector.broadcast %210 : vector<1x128xf32> to vector<8x128xf32>
    %212 = arith.select %209, %211, %205 : vector<8x128xi1>, vector<8x128xf32>
    %c3_i32 = arith.constant 3 : i32
    %213 = vector.broadcast %c3_i32 : i32 to vector<8x1xi32>
    %214 = arith.cmpi eq, %190, %213 : vector<8x1xi32>
    %215 = vector.shape_cast %214 : vector<8x1xi1> to vector<8x1xi1>
    %216 = vector.broadcast %215 : vector<8x1xi1> to vector<8x128xi1>
    %217 = vector.shape_cast %189 : vector<1x128xf32> to vector<1x128xf32>
    %218 = vector.broadcast %217 : vector<1x128xf32> to vector<8x128xf32>
    %219 = arith.select %216, %218, %212 : vector<8x128xi1>, vector<8x128xf32>
    %c4_i32_46 = arith.constant 4 : i32
    %220 = vector.broadcast %c4_i32_46 : i32 to vector<8x1xi32>
    %221 = arith.cmpi eq, %190, %220 : vector<8x1xi32>
    %222 = vector.shape_cast %221 : vector<8x1xi1> to vector<8x1xi1>
    %223 = vector.broadcast %222 : vector<8x1xi1> to vector<8x128xi1>
    %224 = vector.shape_cast %184 : vector<1x128xf32> to vector<1x128xf32>
    %225 = vector.broadcast %224 : vector<1x128xf32> to vector<8x128xf32>
    %226 = arith.select %223, %225, %219 : vector<8x128xi1>, vector<8x128xf32>
    %cst_47 = arith.constant dense<0.000000e+00> : vector<8x128xf32>
    %227 = tpu.matmul %226, %182, %cst_47 {dimension_numbers = #tpu.dot_dimension_numbers<[1], [0], [0], [1], [0, 0, 1, 1], [], []>} : vector<8x128xf32>, vector<128x128xf32>, vector<8x128xf32> -> vector<8x128xf32>
    %cst_48 = arith.constant 5.000000e-01 : f32
    %228 = vector.broadcast %cst_48 : f32 to vector<8x128xf32>
    %229 = arith.addf %227, %228 : vector<8x128xf32>
    %230 = math.floor %229 : vector<8x128xf32>
    %231 = arith.fptosi %230 : vector<8x128xf32> to vector<8x128xi32>
    %c0_49 = arith.constant 0 : index
    %c0_50 = arith.constant 0 : index
    %232 = vector.load %arg3[%c0_49, %c0_50] : memref<8x128xi32, #tpu.memory_space<vmem>>, vector<8x128xi32>
    tpu.vector_store %arg3[%c0_49, %c0_50], %231 {strides = array<i32>} : memref<8x128xi32, #tpu.memory_space<vmem>>, vector<8x128xi32>,
    return
  }
}

</mosaic_0001>

<bundles_post_ra>
// kernel: _voxelize_device.1
= control target key start
LH: loop header
LB: loop body
LE: loop exit
PB: predicated region body
PF: predicated region fallthrough
CT: control target
= control target key end

     0   :  { %v1907_v2 = vmov 0   ;;  %s1908_s26 = smov 127   ;;  %v2809_v36 = vmov 0  ;;  %v2813_v40 = vmov 0  ;;  %v2815_v41 = vmov 0  ;;  %s2791_s1 = inlined_call_operand.vmem [shape: f32[128,8], index: 1, kind: input, shape index: {}]   ;;  %s2792_s0 = inlined_call_operand.vmem [shape: f32[8,128], index: 0, kind: input, shape index: {}]   ;;  %s2793_s2 = inlined_call_operand.vmem [shape: f32[8,128], index: 2, kind: output, shape index: {0}]   ;;  %s2794_s3 = inlined_call_operand.vmem [shape: s32[8,128], index: 3, kind: output, shape index: {1}]  }
   0x1   :  { %v14_v0 = vld [vmem:[%s2791_s1] sm:$0xff]  ;;  %v15_v1 = vld [vmem:[%s2791_s1 + $0x8] sm:$0xff]  ;;  %1880 = vset.pattern.permute.xlu0 %v1907_v2  ;;  %1879 = vset.pattern.permute.xlu1 %v1907_v2  ;;  %v17_v5 = vld [vmem:[%s2791_s1 + $0x18] sm:$0xff]  ;;  %v2817_v42 = vmov 0 }
   0x2   :  { %v80_v3 = vmul.f32 2.0, %v14_v0  ;;  %v81_v4 = vmul.f32 2.0, %v15_v1  ;;  %v16_v6 = vld [vmem:[%s2791_s1 + $0x10] sm:$0xff]  ;;  %v21_v9 = vld [vmem:[%s2791_s1 + $0x38] sm:$0xff]  ;;  %v83_v10 = vmul.f32 2.0, %v17_v5  ;;  %v19_v12 = vld [vmem:[%s2791_s1 + $0x28] sm:$0xff] }
   0x3   :  { %v82_v11 = vmul.f32 2.0, %v16_v6  ;;  %v18_v13 = vld [vmem:[%s2791_s1 + $0x20] sm:$0xff]  ;;  %v87_v17 = vmul.f32 2.0, %v21_v9  ;;  %v85_v20 = vmul.f32 2.0, %v19_v12  ;;  %v20_v21 = vld [vmem:[%s2791_s1 + $0x30] sm:$0xff]  ;;  %s1909_s1 = smov 126  }
   0x4   :  { %v1950_v7 = vfloor.f32 %v80_v3  ;;  %v1952_v8 = vfloor.f32 %v81_v4  ;;  %v1986_v25 = vfloor.f32 %v83_v10  ;;  %v84_v26 = vmul.f32 2.0, %v18_v13 }
   0x5   :  { %v1988_v27 = vfloor.f32 %v82_v11  ;;  %v1990_v28 = vfloor.f32 %v87_v17  ;;  %v86_v29 = vmul.f32 2.0, %v20_v21  ;;  %v1998_v32 = vfloor.f32 %v85_v20 }
   0x6   :  { %vm128_vm0 = vcmp.lt.f32.partialorder %v1950_v7, 8.0  ;;  %vm112_vm1 = vcmp.ge.f32.partialorder %v1950_v7, 0.0  ;;  %vm129_vm2 = vcmp.lt.f32.partialorder %v1952_v8, 8.0  ;;  %vm113_vm3 = vcmp.ge.f32.partialorder %v1952_v8, 0.0 }
   0x7   :  { %v240_v14 = vsel %vm128_vm0, 1, %v1907_v2  ;;  %v160_v15 = vsel %vm112_vm1, 1, %v1907_v2  ;;  %vm1969_vm4 = vmand %vm112_vm1, %vm128_vm0  ;;  %v1822_v18 = vtrunc.f32 %v1952_v8  ;;  %v1820_v19 = vtrunc.f32 %v1950_v7 }
   0x8   :  { %256 = vrot.lane.b32.xlu1 %v240_v14, %s1908_s26  ;;  %176 = vrot.lane.b32.xlu0 %v160_v15, %s1908_s26  ;;  %vm1980_vm5 = vmand %vm113_vm3, %vm129_vm2  ;;  %v241_v23 = vsel %vm129_vm2, 1, %v1907_v2  ;;  %v161_v24 = vsel %vm113_vm3, 1, %v1907_v2  ;;  %vm115_vm6 = vcmp.ge.f32.partialorder %v1986_v25, 0.0  ;;  %v2001_v33 = vfloor.f32 %v84_v26 }
   0x9   :  { %v1994_v30 = vcvt.f32.s32 %v1822_v18  ;;  %v1996_v31 = vcvt.f32.s32 %v1820_v19  ;;  %vm2797_vm7 = vcmp.lt.f32.partialorder %v1986_v25, 8.0  ;;  %vm114_vm8 = vcmp.ge.f32.partialorder %v1988_v27, 0.0 }
   0xa   :  { %vm2795_vm9 = vcmp.lt.f32.partialorder %v1988_v27, 8.0  ;;  %vm2010_vm10 = vmand %vm115_vm6, %vm2797_vm7  ;;  %vm119_vm11 = vcmp.ge.f32.partialorder %v1990_v28, 0.0  ;;  %v2015_v35 = vfloor.f32 %v86_v29  ;;  %vm2796_vm12 = vcmp.lt.f32.partialorder %v1990_v28, 8.0 }
   0xb   :  { %vm2022_vm13 = vmand %vm114_vm8, %vm2795_vm9  ;;  %v545_v37 = vmul.u32 4, %v1994_v30  ;;  %v544_v38 = vmul.u32 4, %v1996_v31  ;;  %vm117_vm14 = vcmp.ge.f32.partialorder %v1998_v32, 0.0  ;;  %vm2798_vm15 = vcmp.lt.f32.partialorder %v1998_v32, 8.0 }
   0xc   :  { %258 = vrot.lane.b32.xlu1 %v241_v23, %s1908_s26  ;;  %178 = vrot.lane.b32.xlu0 %v161_v24, %s1908_s26  ;;  %v2810_v36 = vsel %vm2022_vm13, 4294967295, %v2809_v36  ;;  %vm2036_vm0 = vmand %vm119_vm11, %vm2796_vm12  ;;  %vm116_vm1 = vcmp.ge.f32.partialorder %v2001_v33, 0.0  ;;  %vm132_vm2 = vcmp.lt.f32.partialorder %v2001_v33, 8.0  ;;  %vm118_vm12 = vcmp.ge.f32.partialorder %v2015_v35, 0.0 }
   0xd   :  { %vm2046_vm3 = vmand %vm117_vm14, %vm2798_vm15  ;;  %vm134_vm7 = vcmp.lt.f32.partialorder %v2015_v35, 8.0  ;;  %v163_v43 = vsel %vm115_vm6, 1, %v1907_v2  ;;  %v162_v44 = vsel %vm114_vm8, 1, %v1907_v2  ;;  %v165_v45 = vsel %vm117_vm14, 1, %v1907_v2 }
   0xe   :  { %v2814_v40 = vsel %vm2046_vm3, 4294967295, %v2813_v40  ;;  %vm2052_vm9 = vmand %vm116_vm1, %vm132_vm2  ;;  %v164_v46 = vsel %vm116_vm1, 1, %v1907_v2  ;;  %v167_v47 = vsel %vm119_vm11, 1, %v1907_v2  ;;  %v166_v48 = vsel %vm118_vm12, 1, %v1907_v2 }
   0xf   :  { %v2816_v41 = vsel %vm2052_vm9, 4294967295, %v2815_v41  ;;  %vm2062_vm15 = vmand %vm118_vm12, %vm134_vm7  ;;  %vm385_vm6 = vcmp.lt.f32.partialorder %v1952_v8, 4.0  ;;  %vm384_vm8 = vcmp.lt.f32.partialorder %v1950_v7, 4.0  ;;  %vm2819_vm11 = vcmp.lt.f32.partialorder %v1986_v25, 8.0 }
  0x10   :  { %322 = vrot.lane.b32.xlu1 %v161_v24, %s1909_s1  ;;  %320 = vrot.lane.b32.xlu0 %v160_v15, %s1909_s1  ;;  %v2818_v42 = vsel %vm2062_vm15, 4294967295, %v2817_v42  ;;  %v401_v49 = vsel %vm385_vm6, 1, %v1907_v2  ;;  %v400_v50 = vsel %vm384_vm8, 1, %v1907_v2  ;;  %v243_v51 = vsel %vm2819_vm11, 1, %v1907_v2 }
  0x11   :  { %vm2820_vm12 = vcmp.lt.f32.partialorder %v1988_v27, 8.0  ;;  %v1826_v53 = vtrunc.f32 %v1986_v25  ;;  %v1824_v54 = vtrunc.f32 %v1988_v27  ;;  %vm2821_vm14 = vcmp.lt.f32.partialorder %v1998_v32, 8.0 }
  0x12   :  { %v242_v52 = vsel %vm2820_vm12, 1, %v1907_v2  ;;  %v245_v55 = vsel %vm2821_vm14, 1, %v1907_v2  ;;  %v244_v56 = vsel %vm132_vm2, 1, %v1907_v2  ;;  %v1830_v59 = vtrunc.f32 %v1998_v32 }
  0x13   :  { %v2114_v57 = vcvt.f32.s32 %v1826_v53  ;;  %v2116_v58 = vcvt.f32.s32 %v1824_v54  ;;  %v1828_v60 = vtrunc.f32 %v2001_v33  ;;  %vm2822_vm1 = vcmp.lt.f32.partialorder %v1990_v28, 8.0 }
  0x14   :  { %562 = vrot.lane.b32.xlu1 %v545_v37, %s1908_s26  ;;  %560 = vrot.lane.b32.xlu0 %v544_v38, %s1908_s26  ;;  %v247_v61 = vsel %vm2822_vm1, 1, %v1907_v2  ;;  %v246_v62 = vsel %vm134_vm7, 1, %v1907_v2  ;;  %v1834_v63 = vtrunc.f32 %v1990_v28  ;;  %v1832_v0 = vtrunc.f32 %v2015_v35 }
  0x15   :  { %v547_v1 = vmul.u32 4, %v2114_v57  ;;  %v546_v3 = vmul.u32 4, %v2116_v58  ;;  %v2132_v4 = vcvt.f32.s32 %v1830_v59  ;;  %v2134_v5 = vcvt.f32.s32 %v1828_v60 }
  0x16   :  { %v2140_v8 = vcvt.f32.s32 %v1834_v63  ;;  %v2142_v9 = vcvt.f32.s32 %v1832_v0  ;;  %vm387_vm7 = vcmp.lt.f32.partialorder %v1986_v25, 4.0  ;;  %vm386_vm2 = vcmp.lt.f32.partialorder %v1988_v27, 4.0  ;;  %v13_v0 = vld [vmem:[%s2792_s0] sm:$0xff] }
  0x17   :  { %v549_v6 = vmul.u32 4, %v2132_v4  ;;  %v548_v7 = vmul.u32 4, %v2134_v5  ;;  %v403_v12 = vsel %vm387_vm7, 1, %v1907_v2  ;;  %v402_v13 = vsel %vm386_vm2, 1, %v1907_v2 }
  0x18   :  { %182 = vrot.lane.b32.xlu1 %v163_v43, %s1908_s26  ;;  %180 = vrot.lane.b32.xlu0 %v162_v44, %s1908_s26  ;;  %v551_v10 = vmul.u32 4, %v2140_v8  ;;  %v550_v11 = vmul.u32 4, %v2142_v9  ;;  %vm389_vm6 = vcmp.lt.f32.partialorder %v1998_v32, 4.0  ;;  %vm388_vm8 = vcmp.lt.f32.partialorder %v2001_v33, 4.0 }
  0x19   :  { %v405_v14 = vsel %vm389_vm6, 1, %v1907_v2  ;;  %v404_v15 = vsel %vm388_vm8, 1, %v1907_v2  ;;  %vm391_vm11 = vcmp.lt.f32.partialorder %v1990_v28, 4.0  ;;  %vm390_vm12 = vcmp.lt.f32.partialorder %v2015_v35, 4.0 }
  0x1a   :  { %v407_v17 = vsel %vm391_vm11, 1, %v1907_v2  ;;  %v406_v18 = vsel %vm390_vm12, 1, %v1907_v2  ;;  %v1910_v19 = vmov 256   ;;  %v1911_v53 = vmov 0.0|0.0  }
  0x1b   :  { %1746 = vmatprep.subr.bf16.mxu0 %v1911_v53  ;;  %1770 = vmatprep.subr.bf16.mxu1 %v1911_v53 }
  0x1c   :  { %186 = vrot.lane.b32.xlu1 %v165_v45, %s1908_s26  ;;  %184 = vrot.lane.b32.xlu0 %v164_v46, %s1908_s26 }
  0x20   :  { %190 = vrot.lane.b32.xlu1 %v167_v47, %s1908_s26  ;;  %188 = vrot.lane.b32.xlu0 %v166_v48, %s1908_s26 }
  0x24   :  { %418 = vrot.lane.b32.xlu1 %v401_v49, %s1909_s1  ;;  %416 = vrot.lane.b32.xlu0 %v400_v50, %s1909_s1 }
  0x28   :  { %610 = vrot.lane.b32.xlu1 %v1994_v30, %s1909_s1  ;;  %608 = vrot.lane.b32.xlu0 %v1996_v31, %s1909_s1 }
  0x2c   :  { %262 = vrot.lane.b32.xlu1 %v243_v51, %s1908_s26  ;;  %260 = vrot.lane.b32.xlu0 %v242_v52, %s1908_s26 }
  0x30   :  { %266 = vrot.lane.b32.xlu1 %v245_v55, %s1908_s26  ;;  %264 = vrot.lane.b32.xlu0 %v244_v56, %s1908_s26 }
  0x34   :  { %270 = vrot.lane.b32.xlu1 %v247_v61, %s1908_s26  ;;  %268 = vrot.lane.b32.xlu0 %v246_v62, %s1908_s26 }
  0x38   :  { %566 = vrot.lane.b32.xlu1 %v547_v1, %s1908_s26  ;;  %564 = vrot.lane.b32.xlu0 %v546_v3, %s1908_s26  ;;  %v49_v1 = vmul.f32 2.0, %v13_v0 }
  0x3c   :  { %570 = vrot.lane.b32.xlu1 %v549_v6, %s1908_s26  ;;  %568 = vrot.lane.b32.xlu0 %v548_v7, %s1908_s26  ;;  %v2227_v7 = vfloor.f32 %v49_v1  ;;  %v30_v1 = vlaneseq }
  0x40   :  { %574 = vrot.lane.b32.xlu1 %v551_v10, %s1908_s26  ;;  %572 = vrot.lane.b32.xlu0 %v550_v11, %s1908_s26 }
  0x44   :  { %326 = vrot.lane.b32.xlu1 %v163_v43, %s1909_s1  ;;  %324 = vrot.lane.b32.xlu0 %v162_v44, %s1909_s1  ;;  %v2823_v43 = vmov 0  ;;  %v529_v44 = vmul.u32 32, %v1994_v30 }
  0x48   :  { %330 = vrot.lane.b32.xlu1 %v165_v45, %s1909_s1  ;;  %328 = vrot.lane.b32.xlu0 %v164_v46, %s1909_s1  ;;  %v528_v45 = vmul.u32 32, %v1996_v31 }
  0x4c   :  { %334 = vrot.lane.b32.xlu1 %v167_v47, %s1909_s1  ;;  %332 = vrot.lane.b32.xlu0 %v166_v48, %s1909_s1 }
  0x50   :  { %422 = vrot.lane.b32.xlu1 %v403_v12, %s1909_s1  ;;  %420 = vrot.lane.b32.xlu0 %v402_v13, %s1909_s1 }
  0x54   :  { %426 = vrot.lane.b32.xlu1 %v405_v14, %s1909_s1  ;;  %424 = vrot.lane.b32.xlu0 %v404_v15, %s1909_s1 }
  0x58   :  { %430 = vrot.lane.b32.xlu1 %v407_v17, %s1909_s1  ;;  %428 = vrot.lane.b32.xlu0 %v406_v18, %s1909_s1 }
  0x5c   :  { %614 = vrot.lane.b32.xlu1 %v2114_v57, %s1909_s1  ;;  %612 = vrot.lane.b32.xlu0 %v2116_v58, %s1909_s1 }
  0x60   :  { %618 = vrot.lane.b32.xlu1 %v2132_v4, %s1909_s1  ;;  %616 = vrot.lane.b32.xlu0 %v2134_v5, %s1909_s1 }
  0x64   :  { %622 = vrot.lane.b32.xlu1 %v2140_v8, %s1909_s1  ;;  %620 = vrot.lane.b32.xlu0 %v2142_v9, %s1909_s1 }
  0x68   :  { %697 = vperm.xlu1 %1879, %v1910_v19   ;;  %700 = vperm.xlu0 %1880, %v1910_v19  }
  0x6c   :  { %703 = vperm.xlu1 %1879, %v1910_v19   ;;  %706 = vperm.xlu0 %1880, %v1910_v19  }
  0x70   :  { %709 = vperm.xlu1 %1879, %v1910_v19   ;;  %712 = vperm.xlu0 %1880, %v1910_v19  }
  0x7a   :  { %v257_v20 = vpop.permute.xlu1 %256  ;;  %v177_v21 = vpop.permute.xlu0 %176 }
  0x7b   :  { %vm208_vm14 = vcmp.ne.s32.totalorder %v177_v21, 0  ;;  %vm288_vm6 = vcmp.ne.s32.totalorder %v257_v20, 0  ;;  %v2827_v21 = vmov 0 }
  0x7c   :  { %vm224_vm7 = vmand %vm1969_vm4, %vm208_vm14 }
  0x7d   :  { %vm304_vm14 = vmand %vm224_vm7, %vm288_vm6 }
  0x7e   :  { %v259_v23 = vpop.permute.xlu1 %258  ;;  %v179_v24 = vpop.permute.xlu0 %178 }
  0x7f   :  { %vm209_vm1 = vcmp.ne.s32.totalorder %v179_v24, 0  ;;  %vm289_vm11 = vcmp.ne.s32.totalorder %v259_v23, 0 }
  0x80   :  { %vm225_vm12 = vmand %vm1980_vm5, %vm209_vm1 }
  0x81   :  { %vm305_vm9 = vmand %vm225_vm12, %vm289_vm11 }
  0x82   :  { %v323_v25 = vpop.permute.xlu1 %322  ;;  %v321_v26 = vpop.permute.xlu0 %320 }
  0x83   :  { %vm352_vm15 = vcmp.ne.s32.totalorder %v321_v26, 0  ;;  %vm353_vm4 = vcmp.ne.s32.totalorder %v323_v25, 0 }
  0x84   :  { %vm368_vm13 = vmand %vm304_vm14, %vm352_vm15  ;;  %vm52_vm15 = vcmp.lt.f32.partialorder %v2227_v7, 8.0 }
  0x85   :  { %v58_v34 = vsel %vm52_vm15, 1, %v1907_v2 }
  0x86   :  { %v563_v27 = vpop.permute.xlu1 %562  ;;  %v561_v28 = vpop.permute.xlu0 %560 }
  0x87   :  { %v593_v39 = vadd.s32 %v563_v27, %v529_v44  ;;  %v592_v47 = vadd.s32 %v561_v28, %v528_v45  ;;  %v533_v44 = vmul.u32 32, %v2132_v4 }
  0x8a   :  { %v2192_v29 = vpop.permute.xlu1 %182  ;;  %v2194_v32 = vpop.permute.xlu0 %180 }
  0x8e   :  { %v2196_v33 = vpop.permute.xlu1 %186  ;;  %v2198_v35 = vpop.permute.xlu0 %184 }
  0x8f   :  { %vm213_vm6 = vcmp.ne.s32.totalorder %v2196_v33, 0  ;;  %v530_v33 = vmul.u32 32, %v2116_v58  ;;  %v2848_v58 = vmov 0 }
  0x92   :  { %v191_v37 = vpop.permute.xlu1 %190  ;;  %v2200_v38 = vpop.permute.xlu0 %188 }
  0x93   :  { %vm215_vm2 = vcmp.ne.s32.totalorder %v191_v37, 0  ;;  %vm214_vm12 = vcmp.ne.s32.totalorder %v2200_v38, 0 }
  0x94   :  { %vm2206_vm8 = vmand %vm2036_vm0, %vm215_vm2 }
  0x95   :  { %v2824_v43 = vsel %vm2206_vm8, 4294967295, %v2823_v43  ;;  %vm369_vm2 = vmand %vm305_vm9, %vm353_vm4  ;;  %vm51_vm9 = vcmp.ge.f32.partialorder %v2227_v7, 0.0  ;;  %vm2829_vm4 = vnez %v2810_v36  ;;  %v2408_v36 = vshrl.u32 %v30_v1, 7 }
  0x96   :  { %v419_v46 = vpop.permute.xlu1 %418  ;;  %v417_v16 = vpop.permute.xlu0 %416  ;;  %v2235_v14 = vsel %vm51_vm9, 1, %v1907_v2  ;;  %vm2245_vm1 = vmand %vm51_vm9, %vm52_vm15 }
  0x97   :  { %vm449_vm3 = vcmp.ne.s32.totalorder %v419_v46, 0  ;;  %vm448_vm0 = vcmp.ne.s32.totalorder %v417_v16, 0  ;;  %v55_v15 = vrot.slane %v2235_v14, 1  ;;  %v2852_v46 = vmov 0 }
  0x98   :  { %vm465_vm8 = vmand %vm369_vm2, %vm449_vm3  ;;  %vm210_vm3 = vcmp.ne.s32.totalorder %v2194_v32, 0  ;;  %v531_v32 = vmul.u32 32, %v2114_v57  ;;  %v1818_v57 = vtrunc.f32 %v2227_v7 }
  0x99   :  { %vm464_vm5 = vmand %vm368_vm13, %vm448_vm0  ;;  %vm211_vm13 = vcmp.ne.s32.totalorder %v2192_v29, 0  ;;  %vm2249_vm7 = vcmp.ne.s32.totalorder %v55_v15, 0  ;;  %vm2836_vm0 = vnez %v2818_v42 }
  0x9a   :  { %v611_v48 = vpop.permute.xlu1 %610  ;;  %v609_v49 = vpop.permute.xlu0 %608  ;;  %v2828_v21 = vsel %vm2249_vm7, 4294967295, %v2827_v21  ;;  %vm227_vm11 = vmand %vm2010_vm10, %vm211_vm13  ;;  %vm2833_vm13 = vnez %v2816_v41  ;;  %v59_v41 = vrot.slane %v58_v34, 1 }
  0x9b   :  { %v641_v22 = vadd.s32 %v611_v48, %v593_v39  ;;  %v640_v50 = vadd.s32 %v609_v49, %v592_v47  ;;  %vm226_vm14 = vmand %vm2829_vm4, %vm210_vm3  ;;  %v46_v48 = vadd.s32 104, %v2408_v36 }
  0x9c   :  { %vm2281_vm7 = vmand %vm2836_vm0, %vm214_vm12 }
  0x9d   :  { %v657_v30 = vsel %vm465_vm8, %v641_v22, 256  ;;  %v656_v31 = vsel %vm464_vm5, %v640_v50, 256  ;;  %vm212_vm8 = vcmp.ne.s32.totalorder %v2198_v35, 0  ;;  %vm2830_vm5 = vnez %v2814_v40 }
  0x9e   :  { %v263_v51 = vpop.permute.xlu1 %262  ;;  %676 = vperm.xlu1 %1879, %v657_v30   ;;  %v261_v52 = vpop.permute.xlu0 %260  ;;  %673 = vperm.xlu0 %1880, %v656_v31   ;;  %vm2266_vm9 = vmand %vm2830_vm5, %vm213_vm6  ;;  %v1819_v50 = vcvt.f32.s32 %v1818_v57  ;;  %v535_v31 = vmul.u32 32, %v2140_v8  ;;  %v2415_v40 = vsub.s32 0, %v2408_v36  ;;  %v2872_v57 = vmov 0 }
  0x9f   :  { %vm291_vm2 = vcmp.ne.s32.totalorder %v263_v51, 0  ;;  %vm290_vm10 = vcmp.ne.s32.totalorder %v261_v52, 0  ;;  %vm2273_vm3 = vmand %vm2833_vm13, %vm212_vm8  ;;  %v534_v51 = vmul.u32 32, %v2142_v9 }
  0xa0   :  { %vm2285_vm6 = vmand %vm227_vm11, %vm291_vm2  ;;  %v77_v34 = vrot.slane %v1819_v50, 2 }
  0xa1   :  { %vm2289_vm8 = vmand %vm226_vm14, %vm290_vm10 }
  0xa2   :  { %v267_v54 = vpop.permute.xlu1 %266  ;;  %v265_v55 = vpop.permute.xlu0 %264 }
  0xa3   :  { %vm293_vm4 = vcmp.ne.s32.totalorder %v267_v54, 0  ;;  %vm292_vm15 = vcmp.ne.s32.totalorder %v265_v55, 0 }
  0xa4   :  { %vm2297_vm12 = vmand %vm2266_vm9, %vm293_vm4  ;;  %vm2847_vm9 = vnez %v2824_v43  ;;  %vm2319_vm4 = vcmp.ne.s32.totalorder %v59_v41, 0  ;;  %v532_v43 = vmul.u32 32, %v2134_v5 }
  0xa5   :  { %vm2307_vm14 = vmand %vm2273_vm3, %vm292_vm15 }
  0xa6   :  { %v271_v56 = vpop.permute.xlu1 %270  ;;  %v269_v59 = vpop.permute.xlu0 %268 }
  0xa7   :  { %vm295_vm5 = vcmp.ne.s32.totalorder %v271_v56, 0  ;;  %vm294_vm11 = vcmp.ne.s32.totalorder %v269_v59, 0  ;;  %v62_v56 = vrot.slane %v2235_v14, 2 }
  0xa8   :  { %vm2314_vm10 = vmand %vm2847_vm9, %vm295_vm5 }
  0xa9   :  { %v2849_v58 = vsel %vm2314_vm10, 4294967295, %v2848_v58  ;;  %vm2325_vm3 = vmand %vm2281_vm7, %vm294_vm11  ;;  %vm65_vm7 = vcmp.lt.f32.partialorder %v2227_v7, 4.0 }
  0xaa   :  { %v567_v60 = vpop.permute.xlu1 %566  ;;  %v565_v61 = vpop.permute.xlu0 %564  ;;  %v2853_v46 = vsel %vm2325_vm3, 4294967295, %v2852_v46  ;;  %v66_v59 = vsel %vm65_vm7, 1, %v1907_v2 }
  0xab   :  { %v595_v16 = vadd.s32 %v567_v60, %v531_v32  ;;  %v594_v39 = vadd.s32 %v565_v61, %v530_v33  ;;  %v67_v14 = vrot.slane %v66_v59, 2  ;;  %v39_v59 = vadd.s32 48, %v2408_v36 }
  0xac   :  { %v40_v60 = vadd.s32 56, %v2408_v36 }
  0xae   :  { %v2216_v62 = vpop.permute.xlu1 %570  ;;  %v2218_v63 = vpop.permute.xlu0 %568 }
  0xaf   :  { %v597_v30 = vadd.s32 %v2216_v62, %v533_v44  ;;  %v596_v52 = vadd.s32 %v2218_v63, %v532_v43  ;;  %v74_v63 = vmul.u32 4, %v1819_v50  ;;  %v45_v43 = vadd.s32 96, %v2408_v36 }
  0xb1   :  { %v75_v20 = vrot.slane %v74_v63, 1  ;;  %v47_v63 = vadd.s32 112, %v2408_v36 }
  0xb2   :  { %v2223_v3 = vpop.permute.xlu1 %574  ;;  %v2225_v6 = vpop.permute.xlu0 %572 }
  0xb3   :  { %v599_v0 = vadd.s32 %v2223_v3, %v535_v31 }
  0xb6   :  { %v327_v10 = vpop.permute.xlu1 %326  ;;  %v325_v11 = vpop.permute.xlu0 %324 }
  0xb7   :  { %vm355_vm0 = vcmp.ne.s32.totalorder %v327_v10, 0  ;;  %vm354_vm2 = vcmp.ne.s32.totalorder %v325_v11, 0  ;;  %v598_v10 = vadd.s32 %v2225_v6, %v534_v51 }
  0xb8   :  { %vm371_vm15 = vmand %vm2285_vm6, %vm355_vm0  ;;  %vm2856_vm6 = vnez %v2828_v21 }
  0xb9   :  { %vm370_vm9 = vmand %vm2289_vm8, %vm354_vm2 }
  0xba   :  { %v2230_v12 = vpop.permute.xlu1 %330  ;;  %v2232_v13 = vpop.permute.xlu0 %328  ;;  %vm2857_vm8 = vmand %vm2245_vm1, %vm2856_vm6  ;;  %vm2863_vm6 = vnez %v2853_v46  ;;  %v1914_v46 = vmov 1.0|1.0  }
  0xbb   :  { %vm357_vm10 = vcmp.ne.s32.totalorder %v2230_v12, 0  ;;  %vm356_vm11 = vcmp.ne.s32.totalorder %v2232_v13, 0  ;;  %vm2348_vm0 = vmand %vm2857_vm8, %vm2319_vm4 }
  0xbc   :  { %vm373_vm1 = vmand %vm2297_vm12, %vm357_vm10 }
  0xbe   :  { %v2238_v17 = vpop.permute.xlu1 %334  ;;  %v2240_v18 = vpop.permute.xlu0 %332 }
  0xbf   :  { %vm358_vm12 = vcmp.ne.s32.totalorder %v2240_v18, 0  ;;  %v73_v18 = vmul.u32 32, %v1819_v50 }
  0xc0   :  { %vm374_vm8 = vmand %vm2863_vm6, %vm358_vm12 }
  0xc1   :  { %v76_v25 = vadd.s32 %v75_v20, %v73_v18 }
  0xc2   :  { %v423_v23 = vpop.permute.xlu1 %422  ;;  %v421_v24 = vpop.permute.xlu0 %420 }
  0xc3   :  { %vm451_vm13 = vcmp.ne.s32.totalorder %v423_v23, 0  ;;  %vm450_vm5 = vcmp.ne.s32.totalorder %v421_v24, 0  ;;  %v2399_v24 = vand.u32 127, %v30_v1 }
  0xc4   :  { %vm2337_vm3 = vmand %vm371_vm15, %vm451_vm13 }
  0xc5   :  { %vm466_vm2 = vmand %vm370_vm9, %vm450_vm5  ;;  %vm359_vm5 = vcmp.ne.s32.totalorder %v2238_v17, 0  ;;  %vm2862_vm9 = vnez %v2849_v58  ;;  %v1913_v58 = vmov 0.0  }
  0xc6   :  { %v427_v26 = vpop.permute.xlu1 %426  ;;  %v2277_v27 = vpop.permute.xlu0 %424  ;;  %vm372_vm15 = vmand %vm2307_vm14, %vm356_vm11 }
  0xc7   :  { %vm453_vm13 = vcmp.ne.s32.totalorder %v427_v26, 0  ;;  %vm452_vm4 = vcmp.ne.s32.totalorder %v2277_v27, 0  ;;  %vm375_vm7 = vmand %vm2862_vm9, %vm359_vm5  ;;  %vm70_vm5 = vcmp.lt.s32.totalorder %v2399_v24, 64  ;;  %v78_v26 = vadd.s32 %v77_v34, %v76_v25 }
  0xc8   :  { %vm2375_vm10 = vmand %vm373_vm1, %vm453_vm13  ;;  %v2866_v27 = vmov 0 }
  0xc9   :  { %vm468_vm14 = vmand %vm372_vm15, %vm452_vm4  ;;  %vm68_vm15 = vcmp.ne.s32.totalorder %v67_v14, 0 }
  0xca   :  { %v2301_v35 = vpop.permute.xlu1 %430  ;;  %v2303_v37 = vpop.permute.xlu0 %428 }
  0xcb   :  { %vm454_vm11 = vcmp.ne.s32.totalorder %v2303_v37, 0 }
  0xcc   :  { %vm470_vm1 = vmand %vm374_vm8, %vm454_vm11 }
  0xce   :  { %v615_v4 = vpop.permute.xlu1 %614  ;;  %v613_v47 = vpop.permute.xlu0 %612 }
  0xcf   :  { %v643_v5 = vadd.s32 %v615_v4, %v595_v16  ;;  %v642_v49 = vadd.s32 %v613_v47, %v594_v39  ;;  %v41_v16 = vadd.s32 64, %v2408_v36  ;;  %v42_v39 = vadd.s32 72, %v2408_v36 }
  0xd0   :  { %v43_v4 = vadd.s32 80, %v2408_v36  ;;  %v44_v47 = vadd.s32 88, %v2408_v36 }
  0xd1   :  { %v658_v54 = vsel %vm466_vm2, %v642_v49, 256  ;;  %v659_v55 = vsel %vm2337_vm3, %v643_v5, 256  ;;  %vm455_vm3 = vcmp.ne.s32.totalorder %v2301_v35, 0  ;;  %vm2393_vm2 = vcmp.ne.s32.totalorder %v62_v56, 0 }
  0xd2   :  { %v619_v8 = vpop.permute.xlu1 %618  ;;  %679 = vperm.xlu1 %1879, %v658_v54   ;;  %v617_v9 = vpop.permute.xlu0 %616  ;;  %682 = vperm.xlu0 %1880, %v659_v55   ;;  %vm471_vm13 = vmand %vm375_vm7, %vm455_vm3  ;;  %v2870_v35 = vmov 0  ;;  %v34_v5 = vadd.s32 8, %v2408_v36  ;;  %v35_v49 = vadd.s32 16, %v2408_v36  ;;  %v38_v54 = vadd.s32 40, %v2408_v36 }
  0xd3   :  { %v645_v61 = vadd.s32 %v619_v8, %v597_v30  ;;  %v644_v62 = vadd.s32 %v617_v9, %v596_v52  ;;  %vm64_vm4 = vmand %vm2348_vm0, %vm2393_vm2  ;;  %v37_v30 = vadd.s32 32, %v2408_v36  ;;  %v2880_v55 = vmov 0 }
  0xd4   :  { %vm69_vm12 = vmand %vm64_vm4, %vm68_vm15  ;;  %v2883_v8 = vmov 0  ;;  %v36_v56 = vadd.s32 24, %v2408_v36 }
  0xd5   :  { %v660_v11 = vsel %vm468_vm14, %v644_v62, 256  ;;  %v661_v12 = vsel %vm2375_vm10, %v645_v61, 256  ;;  %vm2410_vm10 = vmand %vm69_vm12, %vm70_vm5  ;;  %vm748_vm5 = vcmp.lt.s32.totalorder %v41_v16, %v2399_v24  ;;  %v2890_v61 = vmov 0 }
  0xd6   :  { %v623_v3 = vpop.permute.xlu1 %622  ;;  %685 = vperm.xlu1 %1879, %v660_v11   ;;  %v621_v13 = vpop.permute.xlu0 %620  ;;  %688 = vperm.xlu0 %1880, %v661_v12   ;;  %v2867_v27 = vsel %vm2410_vm10, 4294967295, %v2866_v27  ;;  %v79_v28 = vsel %vm2410_vm10, %v78_v26, 256  ;;  %v1372_v62 = vrot.slane %v2227_v7, 2 }
  0xd7   :  { %v647_v15 = vadd.s32 %v623_v3, %v599_v0  ;;  %v646_v17 = vadd.s32 %v621_v13, %v598_v10  ;;  %v2420_v41 = vrot.slane %v79_v28, %v2415_v40  ;;  %v2532_v0 = vadd.s32 120, %v2408_v36 }
  0xd9   :  { %v662_v21 = vsel %vm470_vm1, %v646_v17, 256  ;;  %v663_v23 = vsel %vm471_vm13, %v647_v15, 256  ;;  %vm2800_vm13 = vmmov 0  }
  0xda   :  { %691 = vperm.xlu1 %1879, %v662_v21   ;;  %694 = vperm.xlu0 %1880, %v663_v23  }
  0xdb   :  { %1673 = vmatprep.mubr.msk.f32.mxu0 %vm2800_vm13, %v1913_v58  ;;  %1708 = vmatprep.mubr.msk.f32.mxu1 %vm2800_vm13, %v1913_v58 }
  0xde   :  { %715 = vperm.xlu1 %1879, %v1910_v19   ;;  %718 = vperm.xlu0 %1880, %v1910_v19   ;;  %v2868_v19 = vmov 0 }
  0xe7   :  { %v698_v29 = vpop.permute.xlu1 %697  ;;  %v701_v32 = vpop.permute.xlu0 %700 }
  0xe8   :  { %vm819_vm0 = vcmp.lt.s32.totalorder %v698_v29, %v2420_v41  ;;  %vm820_vm14 = vcmp.lt.s32.totalorder %v701_v32, %v2420_v41  ;;  %vm732_vm12 = vcmp.eq.s32.totalorder %v698_v29, %v2420_v41 }
  0xe9   :  { %vm2424_vm3 = vmpackc.low %vm820_vm14, %vm819_vm0  ;;  %vm749_vm0 = vcmp.lt.s32.totalorder %v42_v39, %v2399_v24  ;;  %vm733_vm14 = vcmp.eq.s32.totalorder %v701_v32, %v2420_v41 }
  0xea   :  { %v2869_v19 = vsel %vm2424_vm3, 4294967295, %v2868_v19  ;;  %vm2470_vm13 = vmand %vm733_vm14, %vm749_vm0  ;;  %vm2885_vm14 = vcmp.lt.s32.totalorder %v34_v5, %v2399_v24 }
  0xeb   :  { %v704_v33 = vpop.permute.xlu1 %703  ;;  %v707_v42 = vpop.permute.xlu0 %706  ;;  %v781_v23 = vsel %vm2470_vm13, 1, %v1907_v2 }
  0xec   :  { %vm821_vm9 = vcmp.lt.s32.totalorder %v704_v33, %v2420_v41  ;;  %vm822_vm7 = vcmp.lt.s32.totalorder %v707_v42, %v2420_v41  ;;  %vm734_vm10 = vcmp.eq.s32.totalorder %v704_v33, %v2420_v41 }
  0xed   :  { %vm2430_vm11 = vmpackc.low %vm822_vm7, %vm821_vm9  ;;  %vm752_vm9 = vcmp.lt.s32.totalorder %v45_v43, %v2399_v24 }
  0xee   :  { %v2871_v35 = vsel %vm2430_vm11, 4294967295, %v2870_v35 }
  0xef   :  { %v710_v37 = vpop.permute.xlu1 %709  ;;  %v713_v38 = vpop.permute.xlu0 %712 }
  0xf0   :  { %vm823_vm6 = vcmp.lt.s32.totalorder %v710_v37, %v2420_v41  ;;  %vm824_vm8 = vcmp.lt.s32.totalorder %v713_v38, %v2420_v41  ;;  %vm736_vm7 = vcmp.eq.s32.totalorder %v710_v37, %v2420_v41 }
  0xf1   :  { %vm2436_vm2 = vmpackc.low %vm824_vm8, %vm823_vm6 }
  0xf2   :  { %v2873_v57 = vsel %vm2436_vm2, 4294967295, %v2872_v57  ;;  %vm2462_vm6 = vmand %vm732_vm12, %vm748_vm5  ;;  %vm2882_vm12 = vcmp.lt.s32.totalorder %v43_v4, %v2399_v24  ;;  %vm2888_vm2 = vcmp.lt.s32.totalorder %v44_v47, %v2399_v24 }
  0xf3   :  { %vm2479_vm8 = vmand %vm736_vm7, %vm752_vm9  ;;  %v780_v13 = vsel %vm2462_vm6, 1, %v1907_v2 }
  0xf4   :  { %vm2498_vm0 = vmand %vm734_vm10, %vm2882_vm12  ;;  %vm2889_vm10 = vcmp.eq.s32.totalorder %v707_v42, %v2420_v41  ;;  %v784_v25 = vsel %vm2479_vm8, 1, %v1907_v2 }
  0xf5   :  { %v2884_v8 = vsel %vm2498_vm0, 4294967295, %v2883_v8  ;;  %vm2516_vm12 = vmand %vm2889_vm10, %vm2888_vm2  ;;  %vm754_vm10 = vcmp.lt.s32.totalorder %v47_v63, %v2399_v24 }
  0xf6   :  { %v2891_v61 = vsel %vm2516_vm12, 4294967295, %v2890_v61  ;;  %vm2896_vm12 = vcmp.lt.s32.totalorder %v35_v49, %v2399_v24 }
 0x11d   :  { %v677_v44 = vpop.permute.xlu1 %676  ;;  %v674_v45 = vpop.permute.xlu0 %673 }
 0x11e   :  { %vm812_vm1 = vcmp.lt.s32.totalorder %v677_v44, %v2420_v41  ;;  %vm811_vm4 = vcmp.lt.s32.totalorder %v674_v45, %v2420_v41  ;;  %vm725_vm5 = vcmp.eq.s32.totalorder %v677_v44, %v2420_v41 }
 0x11f   :  { %vm1747_vm15 = vmpackc.low %vm812_vm1, %vm811_vm4  ;;  %vm753_vm4 = vcmp.lt.s32.totalorder %v46_v48, %v2399_v24 }
 0x120   :  { %1748 = vmatpush3.bf16.msk.msra.mxu0 %vm1747_vm15, %v1914_v46  ;;  %vm737_vm15 = vcmp.eq.s32.totalorder %v713_v38, %v2420_v41 }
 0x121   :  { %1749 = vmatprep.subr.bf16.mxu0 %v1911_v53  ;;  %vm2487_vm1 = vmand %vm737_vm15, %vm753_vm4 }
 0x122   :  { %v2881_v55 = vsel %vm2487_vm1, 4294967295, %v2880_v55  ;;  %vm2504_vm4 = vmand %vm725_vm5, %vm2885_vm14  ;;  %vm2892_vm5 = vcmp.lt.s32.totalorder %v2408_v36, %v2399_v24  ;;  %vm2893_vm14 = vcmp.eq.s32.totalorder %v674_v45, %v2420_v41  ;;  %vm2899_vm1 = vcmp.lt.s32.totalorder %v37_v30, %v2399_v24 }
 0x123   :  { %vm2525_vm11 = vmand %vm2893_vm14, %vm2892_vm5  ;;  %v773_v6 = vsel %vm2504_vm4, 1, %v1907_v2 }
 0x124   :  { %v772_v12 = vsel %vm2525_vm11, 1, %v1907_v2 }
 0x151   :  { %v680_v51 = vpop.permute.xlu1 %679  ;;  %v683_v52 = vpop.permute.xlu0 %682 }
 0x152   :  { %vm813_vm9 = vcmp.lt.s32.totalorder %v680_v51, %v2420_v41  ;;  %vm814_vm7 = vcmp.lt.s32.totalorder %v683_v52, %v2420_v41  ;;  %vm726_vm15 = vcmp.eq.s32.totalorder %v680_v51, %v2420_v41 }
 0x153   :  { %vm1750_vm2 = vmpackc.low %vm814_vm7, %vm813_vm9  ;;  %vm2900_vm9 = vcmp.lt.s32.totalorder %v38_v54, %v2399_v24 }
 0x154   :  { %vm2537_vm0 = vmand %vm726_vm15, %vm2896_vm12  ;;  %1751 = vmatpush3.bf16.msk.msra.mxu0 %vm1750_vm2, %v1914_v46  ;;  %vm746_vm12 = vcmp.lt.s32.totalorder %v39_v59, %v2399_v24  ;;  %vm747_vm2 = vcmp.lt.s32.totalorder %v40_v60, %v2399_v24 }
 0x155   :  { %v686_v1 = vpop.permute.xlu1 %685  ;;  %v689_v10 = vpop.permute.xlu0 %688  ;;  %1752 = vmatprep.subr.bf16.mxu0 %v1911_v53  ;;  %v774_v28 = vsel %vm2537_vm0, 1, %v1907_v2  ;;  %vm2907_vm0 = vnez %v2884_v8 }
 0x156   :  { %vm728_vm5 = vcmp.eq.s32.totalorder %v686_v1, %v2420_v41  ;;  %vm815_vm14 = vcmp.lt.s32.totalorder %v686_v1, %v2420_v41  ;;  %vm729_vm3 = vcmp.eq.s32.totalorder %v689_v10, %v2420_v41  ;;  %v782_v16 = vsel %vm2907_vm0, 1, %v1907_v2 }
 0x157   :  { %vm760_vm15 = vmand %vm728_vm5, %vm2899_vm1  ;;  %vm755_vm1 = vcmp.lt.s32.totalorder %v2532_v0, %v2399_v24  ;;  %vm2902_vm5 = vcmp.lt.s32.totalorder %v36_v56, %v2399_v24  ;;  %vm2913_vm0 = vmmov 0  }
 0x158   :  { %v776_v3 = vsel %vm760_vm15, 1, %v1907_v2  ;;  %vm761_vm7 = vmand %vm729_vm3, %vm2900_vm9  ;;  %vm2901_vm3 = vcmp.lt.s32.totalorder %v689_v10, %v2420_v41  ;;  %vm2903_vm9 = vcmp.eq.s32.totalorder %v683_v52, %v2420_v41 }
 0x159   :  { %v788_v14 = vadd.s32 %v776_v3, %v772_v12  ;;  %v777_v15 = vsel %vm761_vm7, 1, %v1907_v2  ;;  %vm1753_vm11 = vmpackc.low %vm2901_vm3, %vm815_vm14  ;;  %v692_v17 = vpop.permute.xlu1 %691  ;;  %v695_v18 = vpop.permute.xlu0 %694 }
 0x15a   :  { %vm2577_vm15 = vmand %vm2903_vm9, %vm2902_vm5  ;;  %v789_v21 = vadd.s32 %v777_v15, %v773_v6  ;;  %1754 = vmatpush3.bf16.msk.msra.mxu0 %vm1753_vm11, %v1914_v46  ;;  %vm730_vm6 = vcmp.eq.s32.totalorder %v692_v17, %v2420_v41  ;;  %vm817_vm4 = vcmp.lt.s32.totalorder %v692_v17, %v2420_v41  ;;  %vm731_vm7 = vcmp.eq.s32.totalorder %v695_v18, %v2420_v41 }
 0x15b   :  { %v792_v34 = vadd.s32 %v788_v14, %v780_v13  ;;  %vm762_vm14 = vmand %vm730_vm6, %vm746_vm12  ;;  %vm818_vm3 = vcmp.lt.s32.totalorder %v695_v18, %v2420_v41  ;;  %1755 = vmatprep.subr.bf16.mxu0 %v1911_v53  ;;  %vm2906_vm11 = vnez %v2881_v55  ;;  %v775_v33 = vsel %vm2577_vm15, 1, %v1907_v2 }
 0x15c   :  { %v785_v26 = vsel %vm2906_vm11, 1, %v1907_v2  ;;  %v793_v29 = vadd.s32 %v789_v21, %v781_v23  ;;  %v778_v32 = vsel %vm762_vm14, 1, %v1907_v2  ;;  %vm763_vm13 = vmand %vm731_vm7, %vm747_vm2  ;;  %vm2908_vm2 = vnez %v2891_v61 }
 0x15d   :  { %v796_v42 = vadd.s32 %v792_v34, %v784_v25  ;;  %v790_v37 = vadd.s32 %v778_v32, %v774_v28  ;;  %v779_v38 = vsel %vm763_vm13, 1, %v1907_v2  ;;  %vm1756_vm8 = vmpackc.low %vm818_vm3, %vm817_vm4  ;;  %v716_v44 = vpop.permute.xlu1 %715  ;;  %v719_v45 = vpop.permute.xlu0 %718  ;;  %v783_v4 = vsel %vm2908_vm2, 1, %v1907_v2 }
 0x15e   :  { %v797_v39 = vadd.s32 %v793_v29, %v785_v26  ;;  %v791_v43 = vadd.s32 %v779_v38, %v775_v33  ;;  %1757 = vmatpush3.bf16.msk.msra.mxu0 %vm1756_vm8, %v1914_v46  ;;  %vm738_vm12 = vcmp.eq.s32.totalorder %v716_v44, %v2420_v41  ;;  %vm739_vm9 = vcmp.eq.s32.totalorder %v719_v45, %v2420_v41 }
 0x15f   :  { %vm770_vm5 = vmand %vm738_vm12, %vm754_vm10  ;;  %v794_v47 = vadd.s32 %v790_v37, %v782_v16  ;;  %1758 = vmatprep.subr.bf16.mxu0 %v1911_v53  ;;  %vm2909_vm10 = vnez %v2869_v19  ;;  %vm2910_vm6 = vnez %v2871_v35  ;;  %vm826_vm4 = vcmp.lt.s32.totalorder %v719_v45, %v2420_v41 }
 0x160   :  { %v786_v48 = vsel %vm770_vm5, 1, %v1907_v2  ;;  %vm771_vm15 = vmand %vm739_vm9, %vm755_vm1  ;;  %v795_v5 = vadd.s32 %v791_v43, %v783_v4  ;;  %v800_v49 = vadd.s32 %v797_v39, %v796_v42  ;;  %vm825_vm1 = vcmp.lt.s32.totalorder %v716_v44, %v2420_v41 }
 0x161   :  { %v798_v22 = vadd.s32 %v794_v47, %v786_v48  ;;  %v787_v50 = vsel %vm771_vm15, 1, %v1907_v2  ;;  %vm2911_vm7 = vnez %v2873_v57  ;;  %vm1768_vm14 = vmpackc.low %vm826_vm4, %vm825_vm1  ;;  %vm2912_vm11 = vnez %v2867_v27 }
 0x162   :  { %v799_v30 = vadd.s32 %v795_v5, %v787_v50  ;;  %1760 = vmatpush3.bf16.msk.msra.mxu0 %vm2909_vm10, %v1914_v46  ;;  %vm861_vm8 = vcmp.eq.s32.totalorder %v2408_v36, 0  ;;  %v1369_v61 = vrot.slane %v2227_v7, 1  ;;  %vm948_vm10 = vcmp.eq.s32.totalorder %v2408_v36, 1 }
 0x163   :  { %1761 = vmatprep.subr.bf16.mxu0 %v1911_v53  ;;  %vm1393_vm1 = vcmp.eq.s32.totalorder %v2408_v36, 3  ;;  %vm1401_vm4 = vcmp.eq.s32.totalorder %v2408_v36, 4  ;;  %v1915_v34 = vmov 1  }
 0x164   :  { %v801_v31 = vadd.s32 %v799_v30, %v798_v22  ;;  %1881 = vset.pattern.permute.xlu0 %v1915_v34 }
 0x166   :  { %v802_v51 = vadd.s32 %v801_v31, %v800_v49  ;;  %1763 = vmatpush3.bf16.msk.msra.mxu0 %vm2910_vm6, %v1914_v46  ;;  %vm1385_vm6 = vcmp.eq.s32.totalorder %v2408_v36, 2 }
 0x167   :  { %1764 = vmatprep.subr.bf16.mxu0 %v1911_v53 }
 0x168   :  { %v803_v52 = vrot.slane %v802_v51, 4 }
 0x16a   :  { %v804_v54 = vadd.s32 %v803_v52, %v802_v51  ;;  %1766 = vmatpush3.bf16.msk.msra.mxu0 %vm2911_vm7, %v1914_v46 }
 0x16b   :  { %1767 = vmatprep.subr.bf16.mxu0 %v1911_v53 }
 0x16c   :  { %v805_v19 = vrot.slane %v804_v54, 2 }
 0x16e   :  { %v806_v55 = vadd.s32 %v805_v19, %v804_v54  ;;  %1769 = vmatpush3.bf16.msk.msra.mxu0 %vm1768_vm14, %v1914_v46 }
 0x16f   :  { %1794 = vmatprep.subr.bf16.mxu0 %v1911_v53 }
 0x170   :  { %v807_v35 = vrot.slane %v806_v55, 1 }
 0x172   :  { %v808_v8 = vadd.s32 %v807_v35, %v806_v55 }
 0x174   :  { %vm809_vm3 = vcmp.eq.s32.totalorder %v808_v8, 0  ;;  %v945_v59 = vcvt.s32.f32 %v808_v8  ;;  %vm941_vm5 = vcmp.lt.s32.totalorder %v808_v8, 5 }
 0x175   :  { %vm810_vm13 = vmand %vm2912_vm11, %vm809_vm3 }
 0x176   :  { %v1506_v41 = vsel %vm810_vm13, 1.0, %v1913_v58 }
 0x177   :  { %v867_v57 = vrot.slane %v1506_v41, %v2415_v40 }
 0x179   :  { %1674 = vmatmul.mubr.msk.f32.vlgmr.msra.gmra.mrb[0].mxu0 %vm861_vm8, %v867_v57 }
 0x17a   :  { %1743 = vmatprep.mubr.msk.f32.mxu0 %vm2913_vm0, %v1913_v58 }
 0x24c   :  { %v935_v9 = vpop.f32.mrb[0].mxu0 }
 0x24d   :  { %vm939_vm12 = vcmp.lt.f32.partialorder %v935_v9, 20.0  ;;  %v944_v56 = vmul.f32 5.0, %v935_v9  ;;  %v1675_v60 = vpop.f32.mrb[1].mxu0  ;;  %v999_v10 = vrot.slane %v935_v9, %v2415_v40 }
 0x24e   :  { %vm940_vm2 = vmand %vm2912_vm11, %vm939_vm12 }
 0x24f   :  { %vm942_vm9 = vmand %vm940_vm2, %vm941_vm5  ;;  %v946_v63 = vadd.f32 %v945_v59, %v944_v56 }
 0x250   :  { %vm943_vm15 = vmand %vm940_vm2, %vm809_vm3  ;;  %v1573_v0 = vsel %vm942_vm9, 1.0, %v1913_v58 }
 0x251   :  { %v947_v1 = vsel %vm942_vm9, %v946_v63, -1.0  ;;  %v1572_v11 = vsel %vm943_vm15, 1.0, %v1913_v58  ;;  %v1378_v27 = vrot.slane %v1573_v0, %v2415_v40 }
 0x252   :  { %v1003_v12 = vrot.slane %v947_v1, %v2415_v40  ;;  %v1367_v3 = vmul.f32 %v1572_v11, %v2227_v7  ;;  %v1371_v13 = vmul.f32 %v1572_v11, %v1369_v61  ;;  %v1374_v6 = vmul.f32 %v1572_v11, %v1372_v62 }
 0x253   :  { %v1379_v14 = vsel %vm861_vm8, %v1378_v27, 0.0  ;;  %v1407_v21 = vrot.slane %v1572_v11, %v2415_v40 }
 0x254   :  { %v1004_v15 = vsel %vm948_vm10, %v999_v10, %v1003_v12  ;;  %v1383_v17 = vrot.slane %v1367_v3, %v2415_v40  ;;  %v1391_v58 = vrot.slane %v1371_v13, %v2415_v40  ;;  %v1399_v18 = vrot.slane %v1374_v6, %v2415_v40 }
 0x255   :  { %1020 = vxpose.xlu1.b32.start [1/16] %v1004_v15, 128 }
 0x256   :  { %v1384_v7 = vsel %vm948_vm10, %v1383_v17, %v1379_v14 }
 0x257   :  { %v1392_v20 = vsel %vm1385_vm6, %v1391_v58, %v1384_v7 }
 0x258   :  { %v1400_v23 = vsel %vm1393_vm1, %v1399_v18, %v1392_v20 }
 0x259   :  { %1021 = vxpose.xlu1.b32.cont [2/16] %v1003_v12, 128  ;;  %v2678_v25 = vsel %vm1401_vm4, %v1407_v21, %v1400_v23 }
 0x25d   :  { %1022 = vxpose.xlu1.b32.cont [3/16] %v1003_v12, 128 }
 0x261   :  { %1023 = vxpose.xlu1.b32.cont [4/16] %v1003_v12, 128 }
 0x265   :  { %1024 = vxpose.xlu1.b32.cont [5/16] %v1003_v12, 128 }
 0x269   :  { %1025 = vxpose.xlu1.b32.cont [6/16] %v1003_v12, 128 }
 0x26d   :  { %1026 = vxpose.xlu1.b32.cont [7/16] %v1003_v12, 128 }
 0x271   :  { %1027 = vxpose.xlu1.b32.cont [8/16] %v1003_v12, 128 }
 0x275   :  { %1028 = vxpose.xlu1.b32.cont [9/16] %v1003_v12, 128 }
 0x279   :  { %1029 = vxpose.xlu1.b32.cont [10/16] %v1003_v12, 128 }
 0x27d   :  { %1030 = vxpose.xlu1.b32.cont [11/16] %v1003_v12, 128 }
 0x281   :  { %1031 = vxpose.xlu1.b32.cont [12/16] %v1003_v12, 128 }
 0x285   :  { %1032 = vxpose.xlu1.b32.cont [13/16] %v1003_v12, 128 }
 0x289   :  { %1033 = vxpose.xlu1.b32.cont [14/16] %v1003_v12, 128 }
 0x28d   :  { %1034 = vxpose.xlu1.b32.cont [15/16] %v1003_v12, 128 }
 0x291   :  { %1035 = vxpose.xlu1.b32.end [16/16] %v1003_v12, 128 }
 0x2d5   :  { %v1036_v36 = vpop.trf.xlu1 }
 0x2d6   :  { %v1052_v40 = vadd.f32 0.5, %v1036_v36 }
 0x2d8   :  { %v1068_v26 = vfloor.f32 %v1052_v40 }
 0x2d9   :  { %v1037_v28 = vpop.trf.xlu1 }
 0x2da   :  { %v1836_v29 = vtrunc.f32 %v1068_v26  ;;  %v1053_v32 = vadd.f32 0.5, %v1037_v28 }
 0x2dc   :  { %v1837_v33 = vcvt.f32.s32 %v1836_v29  ;;  %v1069_v42 = vfloor.f32 %v1053_v32 }
 0x2dd   :  { %v1038_v37 = vpop.trf.xlu1 }
 0x2de   :  { %1268 = vperm.xlu0 %1881, %v1837_v33   ;;  %v1838_v38 = vtrunc.f32 %v1069_v42  ;;  %v1054_v45 = vadd.f32 0.5, %v1038_v37 }
 0x2e0   :  { %v1839_v16 = vcvt.f32.s32 %v1838_v38  ;;  %v1070_v43 = vfloor.f32 %v1054_v45 }
 0x2e1   :  { %v1039_v44 = vpop.trf.xlu1 }
 0x2e2   :  { %1882 = vset.pattern.permute.xlu0 %v1907_v2  ;;  %v1840_v47 = vtrunc.f32 %v1070_v43  ;;  %v1055_v48 = vadd.f32 0.5, %v1039_v44 }
 0x2e3   :  { %1101 = vperm.xlu0 %1882, %v1837_v33  }
 0x2e4   :  { %v1841_v49 = vcvt.f32.s32 %v1840_v47  ;;  %v1071_v22 = vfloor.f32 %v1055_v48 }
 0x2e5   :  { %v1040_v39 = vpop.trf.xlu1 }
 0x2e6   :  { %v1842_v31 = vtrunc.f32 %v1071_v22  ;;  %v1056_v54 = vadd.f32 0.5, %v1040_v39 }
 0x2e7   :  { %1883 = vset.pattern.permute.xlu0 %v1915_v34 }
 0x2e8   :  { %1271 = vperm.xlu0 %1883, %v1839_v16   ;;  %v1843_v55 = vcvt.f32.s32 %v1842_v31  ;;  %v1072_v41 = vfloor.f32 %v1056_v54 }
 0x2e9   :  { %v1041_v4 = vpop.trf.xlu1 }
 0x2ea   :  { %v1844_v9 = vtrunc.f32 %v1072_v41  ;;  %v1057_v59 = vadd.f32 0.5, %v1041_v4 }
 0x2ec   :  { %1884 = vset.pattern.permute.xlu0 %v1907_v2  ;;  %v1845_v62 = vcvt.f32.s32 %v1844_v9  ;;  %v1073_v0 = vfloor.f32 %v1057_v59 }
 0x2ed   :  { %1104 = vperm.xlu0 %1884, %v1839_v16   ;;  %v1042_v5 = vpop.trf.xlu1 }
 0x2ee   :  { %v1846_v11 = vtrunc.f32 %v1073_v0  ;;  %v1058_v12 = vadd.f32 0.5, %v1042_v5 }
 0x2f0   :  { %v1847_v13 = vcvt.f32.s32 %v1846_v11  ;;  %v1074_v15 = vfloor.f32 %v1058_v12 }
 0x2f1   :  { %1885 = vset.pattern.permute.xlu0 %v1915_v34  ;;  %v1043_v50 = vpop.trf.xlu1 }
 0x2f2   :  { %v1059_v30 = vadd.f32 0.5, %v1043_v50  ;;  %1274 = vperm.xlu0 %1885, %v1841_v49   ;;  %v1848_v21 = vtrunc.f32 %v1074_v15 }
 0x2f4   :  { %v1075_v51 = vfloor.f32 %v1059_v30  ;;  %v1849_v28 = vcvt.f32.s32 %v1848_v21 }
 0x2f5   :  { %v1044_v52 = vpop.trf.xlu1 }
 0x2f6   :  { %v2685_v19 = vtrunc.f32 %v1075_v51  ;;  %1886 = vset.pattern.permute.xlu0 %v1907_v2  ;;  %v1060_v32 = vadd.f32 0.5, %v1044_v52 }
 0x2f7   :  { %1107 = vperm.xlu0 %1886, %v1841_v49  }
 0x2f8   :  { %v1851_v35 = vcvt.f32.s32 %v2685_v19  ;;  %v1076_v42 = vfloor.f32 %v1060_v32 }
 0x2f9   :  { %v1045_v8 = vpop.trf.xlu1 }
 0x2fa   :  { %1122 = vperm.xlu1 %1879, %v1851_v35   ;;  %v1852_v37 = vtrunc.f32 %v1076_v42  ;;  %v1061_v38 = vadd.f32 0.5, %v1045_v8 }
 0x2fb   :  { %1887 = vset.pattern.permute.xlu0 %v1915_v34 }
 0x2fc   :  { %1277 = vperm.xlu0 %1887, %v1843_v55   ;;  %v1853_v44 = vcvt.f32.s32 %v1852_v37  ;;  %v1077_v45 = vfloor.f32 %v1061_v38 }
 0x2fd   :  { %v1046_v57 = vpop.trf.xlu1 }
 0x2fe   :  { %v1062_v56 = vadd.f32 0.5, %v1046_v57  ;;  %v1854_v16 = vtrunc.f32 %v1077_v45 }
 0x300   :  { %v1078_v60 = vfloor.f32 %v1062_v56  ;;  %1888 = vset.pattern.permute.xlu0 %v1907_v2  ;;  %v1855_v39 = vcvt.f32.s32 %v1854_v16 }
 0x301   :  { %1110 = vperm.xlu0 %1888, %v1843_v55   ;;  %v1047_v61 = vpop.trf.xlu1 }
 0x302   :  { %v2693_v63 = vtrunc.f32 %v1078_v60  ;;  %v1063_v43 = vadd.f32 0.5, %v1047_v61 }
 0x304   :  { %v1857_v1 = vcvt.f32.s32 %v2693_v63  ;;  %v1079_v4 = vfloor.f32 %v1063_v43 }
 0x305   :  { %1889 = vset.pattern.permute.xlu0 %v1915_v34  ;;  %v1048_v10 = vpop.trf.xlu1 }
 0x306   :  { %1280 = vperm.xlu0 %1889, %v1845_v62   ;;  %1131 = vperm.xlu1 %1879, %v1857_v1   ;;  %v1858_v47 = vtrunc.f32 %v1079_v4  ;;  %v1064_v48 = vadd.f32 0.5, %v1048_v10 }
 0x308   :  { %v1859_v5 = vcvt.f32.s32 %v1858_v47  ;;  %v1080_v49 = vfloor.f32 %v1064_v48 }
 0x309   :  { %v1049_v27 = vpop.trf.xlu1 }
 0x30a   :  { %1890 = vset.pattern.permute.xlu0 %v1907_v2  ;;  %v1065_v3 = vadd.f32 0.5, %v1049_v27  ;;  %1903 = vset.pattern.permute.xlu1 %v1915_v34  ;;  %v1860_v22 = vtrunc.f32 %v1080_v49 }
 0x30b   :  { %1113 = vperm.xlu0 %1890, %v1845_v62  }
 0x30c   :  { %v1081_v6 = vfloor.f32 %v1065_v3  ;;  %v1861_v50 = vcvt.f32.s32 %v1860_v22 }
 0x30d   :  { %v1050_v14 = vpop.trf.xlu1 }
 0x30e   :  { %v1862_v17 = vtrunc.f32 %v1081_v6  ;;  %v1066_v58 = vadd.f32 0.5, %v1050_v14 }
 0x30f   :  { %1891 = vset.pattern.permute.xlu0 %v1915_v34 }
 0x310   :  { %1283 = vperm.xlu0 %1891, %v1847_v13   ;;  %v1863_v7 = vcvt.f32.s32 %v1862_v17  ;;  %v1082_v18 = vfloor.f32 %v1066_v58  ;;  %v1906_v58 = vld [vmem:[%s2792_s0] sm:$0xff] }
 0x311   :  { %v1051_v20 = vpop.trf.xlu1 }
 0x312   :  { %v1864_v23 = vtrunc.f32 %v1082_v18  ;;  %v1067_v36 = vadd.f32 0.5, %v1051_v20  ;;  %1307 = vperm.xlu1 %1903, %v1863_v7  }
 0x314   :  { %1892 = vset.pattern.permute.xlu0 %v1907_v2  ;;  %v1865_v40 = vcvt.f32.s32 %v1864_v23  ;;  %v1083_v26 = vfloor.f32 %v1067_v36 }
 0x315   :  { %1116 = vperm.xlu0 %1892, %v1847_v13  }
 0x316   :  { %v1866_v29 = vtrunc.f32 %v1083_v26  ;;  %1310 = vperm.xlu1 %1903, %v1865_v40  }
 0x318   :  { %v1867_v33 = vcvt.f32.s32 %v1866_v29 }
 0x319   :  { %1893 = vset.pattern.permute.xlu0 %v1915_v34 }
 0x31a   :  { %1286 = vperm.xlu0 %1893, %v1849_v28   ;;  %1313 = vperm.xlu1 %1903, %v1867_v33  }
 0x31e   :  { %1894 = vset.pattern.permute.xlu0 %v1907_v2  ;;  %1904 = vset.pattern.permute.xlu1 %v1907_v2 }
 0x31f   :  { %1119 = vperm.xlu0 %1894, %v1849_v28   ;;  %1140 = vperm.xlu1 %1904, %v1863_v7  }
 0x323   :  { %1895 = vset.pattern.permute.xlu0 %v1915_v34  ;;  %1146 = vperm.xlu1 %1904, %v1867_v33  }
 0x324   :  { %1289 = vperm.xlu0 %1895, %v1851_v35  }
 0x328   :  { %1292 = vperm.xlu0 %1895, %v1853_v44  }
 0x32c   :  { %1896 = vset.pattern.permute.xlu0 %v1907_v2 }
 0x32d   :  { %1125 = vperm.xlu0 %1896, %v1853_v44  }
 0x331   :  { %1897 = vset.pattern.permute.xlu0 %v1915_v34 }
 0x332   :  { %1295 = vperm.xlu0 %1897, %v1855_v39  }
 0x336   :  { %1898 = vset.pattern.permute.xlu0 %v1907_v2 }
 0x337   :  { %1128 = vperm.xlu0 %1898, %v1855_v39  }
 0x33b   :  { %1899 = vset.pattern.permute.xlu0 %v1915_v34 }
 0x33c   :  { %1298 = vperm.xlu0 %1899, %v1857_v1  }
 0x340   :  { %1301 = vperm.xlu0 %1899, %v1859_v5  }
 0x344   :  { %1900 = vset.pattern.permute.xlu0 %v1907_v2 }
 0x345   :  { %1134 = vperm.xlu0 %1900, %v1859_v5  }
 0x349   :  { %1901 = vset.pattern.permute.xlu0 %v1915_v34 }
 0x34a   :  { %1304 = vperm.xlu0 %1901, %v1861_v50  }
 0x34e   :  { %1902 = vset.pattern.permute.xlu0 %v1907_v2 }
 0x34f   :  { %1137 = vperm.xlu0 %1902, %v1861_v50  }
 0x353   :  { %1143 = vperm.xlu0 %1902, %v1865_v40  }
 0x357   :  { %1905 = vset.pattern.permute.xlu0 %v1915_v34 }
 0x35d   :  { %v1269_v30 = vpop.permute.xlu0 %1268 }
 0x35e   :  { %vm1315_vm7 = vcmp.eq.s32.totalorder %v1269_v30, %v2399_v24 }
 0x362   :  { %v1102_v31 = vpop.permute.xlu0 %1101 }
 0x363   :  { %vm1148_vm11 = vcmp.eq.s32.totalorder %v1102_v31, %v2399_v24 }
 0x367   :  { %v1272_v51 = vpop.permute.xlu0 %1271 }
 0x368   :  { %vm1316_vm14 = vcmp.eq.s32.totalorder %v1272_v51, %v2399_v24 }
 0x369   :  { %vm1795_vm3 = vmpackc.low %vm1316_vm14, %vm1315_vm7 }
 0x36a   :  { %1796 = vmatpush3.bf16.msk.msra.mxu0 %vm1795_vm3, %v1914_v46 }
 0x36b   :  { %1797 = vmatprep.subr.bf16.mxu0 %v1911_v53 }
 0x36c   :  { %v1105_v52 = vpop.permute.xlu0 %1104 }
 0x36d   :  { %vm1149_vm13 = vcmp.eq.s32.totalorder %v1105_v52, %v2399_v24 }
 0x36e   :  { %vm1771_vm8 = vmpackc.low %vm1149_vm13, %vm1148_vm11 }
 0x36f   :  { %1772 = vmatpush3.bf16.msk.msra.mxu1 %vm1771_vm8, %v1914_v46 }
 0x370   :  { %1773 = vmatprep.subr.bf16.mxu1 %v1911_v53 }
 0x371   :  { %v1275_v2 = vpop.permute.xlu0 %1274 }
 0x372   :  { %vm1317_vm0 = vcmp.eq.s32.totalorder %v1275_v2, %v2399_v24 }
 0x376   :  { %v1108_v34 = vpop.permute.xlu0 %1107 }
 0x377   :  { %vm1150_vm5 = vcmp.eq.s32.totalorder %v1108_v34, %v2399_v24 }
 0x379   :  { %v1123_v9 = vpop.permute.xlu1 %1122 }
 0x37a   :  { %vm1155_vm3 = vcmp.eq.s32.totalorder %v1123_v9, %v2399_v24 }
 0x37b   :  { %v1278_v54 = vpop.permute.xlu0 %1277 }
 0x37c   :  { %vm1318_vm12 = vcmp.eq.s32.totalorder %v1278_v54, %v2399_v24 }
 0x37d   :  { %vm1798_vm2 = vmpackc.low %vm1318_vm12, %vm1317_vm0 }
 0x37e   :  { %1799 = vmatpush3.bf16.msk.msra.mxu0 %vm1798_vm2, %v1914_v46 }
 0x37f   :  { %1800 = vmatprep.subr.bf16.mxu0 %v1911_v53 }
 0x380   :  { %v1111_v19 = vpop.permute.xlu0 %1110 }
 0x381   :  { %vm1151_vm9 = vcmp.eq.s32.totalorder %v1111_v19, %v2399_v24 }
 0x382   :  { %vm1774_vm15 = vmpackc.low %vm1151_vm9, %vm1150_vm5 }
 0x383   :  { %1775 = vmatpush3.bf16.msk.msra.mxu1 %vm1774_vm15, %v1914_v46 }
 0x384   :  { %1776 = vmatprep.subr.bf16.mxu1 %v1911_v53 }
 0x385   :  { %v1281_v55 = vpop.permute.xlu0 %1280  ;;  %v1132_v63 = vpop.permute.xlu1 %1131 }
 0x386   :  { %vm1319_vm10 = vcmp.eq.s32.totalorder %v1281_v55, %v2399_v24 }
 0x38a   :  { %v1114_v35 = vpop.permute.xlu0 %1113 }
 0x38b   :  { %vm1152_vm4 = vcmp.eq.s32.totalorder %v1114_v35, %v2399_v24 }
 0x38f   :  { %v1284_v8 = vpop.permute.xlu0 %1283 }
 0x390   :  { %vm1320_vm6 = vcmp.eq.s32.totalorder %v1284_v8, %v2399_v24 }
 0x391   :  { %vm1801_vm1 = vmpackc.low %vm1320_vm6, %vm1319_vm10  ;;  %v1308_v1 = vpop.permute.xlu1 %1307 }
 0x392   :  { %1802 = vmatpush3.bf16.msk.msra.mxu0 %vm1801_vm1, %v1914_v46 }
 0x393   :  { %1803 = vmatprep.subr.bf16.mxu0 %v1911_v53 }
 0x394   :  { %v1117_v41 = vpop.permute.xlu0 %1116 }
 0x395   :  { %vm1153_vm7 = vcmp.eq.s32.totalorder %v1117_v41, %v2399_v24  ;;  %v1311_v27 = vpop.permute.xlu1 %1310 }
 0x396   :  { %vm1777_vm14 = vmpackc.low %vm1153_vm7, %vm1152_vm4 }
 0x397   :  { %1778 = vmatpush3.bf16.msk.msra.mxu1 %vm1777_vm14, %v1914_v46  ;;  %vm1158_vm14 = vcmp.eq.s32.totalorder %v1132_v63, %v2399_v24 }
 0x398   :  { %1779 = vmatprep.subr.bf16.mxu1 %v1911_v53 }
 0x399   :  { %v1287_v57 = vpop.permute.xlu0 %1286  ;;  %v1314_v3 = vpop.permute.xlu1 %1313 }
 0x39a   :  { %vm1321_vm8 = vcmp.eq.s32.totalorder %v1287_v57, %v2399_v24 }
 0x39e   :  { %v1120_v56 = vpop.permute.xlu0 %1119  ;;  %v1141_v6 = vpop.permute.xlu1 %1140 }
 0x39f   :  { %vm1154_vm11 = vcmp.eq.s32.totalorder %v1120_v56, %v2399_v24 }
 0x3a0   :  { %vm1780_vm13 = vmpackc.low %vm1155_vm3, %vm1154_vm11 }
 0x3a1   :  { %1781 = vmatpush3.bf16.msk.msra.mxu1 %vm1780_vm13, %v1914_v46  ;;  %vm1328_vm13 = vcmp.eq.s32.totalorder %v1308_v1, %v2399_v24 }
 0x3a2   :  { %1782 = vmatprep.subr.bf16.mxu1 %v1911_v53  ;;  %v1147_v15 = vpop.permute.xlu1 %1146 }
 0x3a3   :  { %v1290_v59 = vpop.permute.xlu0 %1289 }
 0x3a4   :  { %vm1322_vm0 = vcmp.eq.s32.totalorder %v1290_v59, %v2399_v24 }
 0x3a5   :  { %vm1804_vm12 = vmpackc.low %vm1322_vm0, %vm1321_vm8 }
 0x3a6   :  { %1805 = vmatpush3.bf16.msk.msra.mxu0 %vm1804_vm12, %v1914_v46  ;;  %vm1329_vm12 = vcmp.eq.s32.totalorder %v1311_v27, %v2399_v24 }
 0x3a7   :  { %v1293_v60 = vpop.permute.xlu0 %1292  ;;  %1806 = vmatprep.subr.bf16.mxu0 %v1911_v53 }
 0x3a8   :  { %vm1323_vm2 = vcmp.eq.s32.totalorder %v1293_v60, %v2399_v24 }
 0x3ac   :  { %v1126_v61 = vpop.permute.xlu0 %1125 }
 0x3ad   :  { %vm1156_vm15 = vcmp.eq.s32.totalorder %v1126_v61, %v2399_v24 }
 0x3b1   :  { %v1296_v62 = vpop.permute.xlu0 %1295 }
 0x3b2   :  { %vm1324_vm5 = vcmp.eq.s32.totalorder %v1296_v62, %v2399_v24 }
 0x3b3   :  { %vm1807_vm9 = vmpackc.low %vm1324_vm5, %vm1323_vm2  ;;  %vm1330_vm2 = vcmp.eq.s32.totalorder %v1314_v3, %v2399_v24 }
 0x3b4   :  { %1808 = vmatpush3.bf16.msk.msra.mxu0 %vm1807_vm9, %v1914_v46  ;;  %vm1816_vm5 = vmpackc.low %vm1330_vm2, %vm1329_vm12  ;;  %vm1161_vm9 = vcmp.eq.s32.totalorder %v1141_v6, %v2399_v24 }
 0x3b5   :  { %1809 = vmatprep.subr.bf16.mxu0 %v1911_v53 }
 0x3b6   :  { %v1129_v0 = vpop.permute.xlu0 %1128 }
 0x3b7   :  { %vm1157_vm10 = vcmp.eq.s32.totalorder %v1129_v0, %v2399_v24 }
 0x3b8   :  { %vm1783_vm6 = vmpackc.low %vm1157_vm10, %vm1156_vm15 }
 0x3b9   :  { %1784 = vmatpush3.bf16.msk.msra.mxu1 %vm1783_vm6, %v1914_v46  ;;  %vm1163_vm6 = vcmp.eq.s32.totalorder %v1147_v15, %v2399_v24 }
 0x3ba   :  { %1785 = vmatprep.subr.bf16.mxu1 %v1911_v53 }
 0x3bb   :  { %v1299_v10 = vpop.permute.xlu0 %1298 }
 0x3bc   :  { %vm1325_vm1 = vcmp.eq.s32.totalorder %v1299_v10, %v2399_v24 }
 0x3bf   :  { %v1302_v11 = vpop.permute.xlu0 %1301 }
 0x3c0   :  { %vm1326_vm4 = vcmp.eq.s32.totalorder %v1302_v11, %v2399_v24 }
 0x3c1   :  { %vm1810_vm7 = vmpackc.low %vm1326_vm4, %vm1325_vm1 }
 0x3c2   :  { %1811 = vmatpush3.bf16.msk.msra.mxu0 %vm1810_vm7, %v1914_v46 }
 0x3c3   :  { %1812 = vmatprep.subr.bf16.mxu0 %v1911_v53 }
 0x3c4   :  { %v1135_v12 = vpop.permute.xlu0 %1134 }
 0x3c5   :  { %vm1159_vm3 = vcmp.eq.s32.totalorder %v1135_v12, %v2399_v24 }
 0x3c6   :  { %vm1786_vm11 = vmpackc.low %vm1159_vm3, %vm1158_vm14 }
 0x3c7   :  { %1787 = vmatpush3.bf16.msk.msra.mxu1 %vm1786_vm11, %v1914_v46 }
 0x3c8   :  { %1788 = vmatprep.subr.bf16.mxu1 %v1911_v53 }
 0x3c9   :  { %v1305_v13 = vpop.permute.xlu0 %1304 }
 0x3ca   :  { %vm1327_vm8 = vcmp.eq.s32.totalorder %v1305_v13, %v2399_v24 }
 0x3cb   :  { %vm1813_vm0 = vmpackc.low %vm1328_vm13, %vm1327_vm8 }
 0x3cc   :  { %1814 = vmatpush3.bf16.msk.msra.mxu0 %vm1813_vm0, %v1914_v46 }
 0x3cd   :  { %1815 = vmatprep.subr.bf16.mxu0 %v1911_v53 }
 0x3ce   :  { %v1138_v14 = vpop.permute.xlu0 %1137 }
 0x3cf   :  { %vm1160_vm15 = vcmp.eq.s32.totalorder %v1138_v14, %v2399_v24 }
 0x3d0   :  { %vm1789_vm10 = vmpackc.low %vm1161_vm9, %vm1160_vm15  ;;  %1817 = vmatpush3.bf16.msk.msra.mxu0 %vm1816_vm5, %v1914_v46 }
 0x3d1   :  { %1790 = vmatpush3.bf16.msk.msra.mxu1 %vm1789_vm10, %v1914_v46 }
 0x3d2   :  { %v1144_v17 = vpop.permute.xlu0 %1143  ;;  %1791 = vmatprep.subr.bf16.mxu1 %v1911_v53 }
 0x3d3   :  { %vm1162_vm1 = vcmp.eq.s32.totalorder %v1144_v17, %v2399_v24  ;;  %1744 = vmatmul.mubr.f32.vlgmr.msra.gmra.mrb[2].mxu0 %v2678_v25 }
 0x3d4   :  { %vm1792_vm4 = vmpackc.low %vm1163_vm6, %vm1162_vm1 }
 0x3d5   :  { %1793 = vmatpush3.bf16.msk.msra.mxu1 %vm1792_vm4, %v1914_v46 }
 0x3d8   :  { %1709 = vmatmul.mubr.f32.vlgmr.msra.gmra.mrb[0].mxu1 %v1906_v58 }
 0x4a6   :  { %v1475_v7 = vpop.f32.mrb[2].mxu0 }
 0x4a7   :  { %v1476_v18 = vadd.f32 0.5, %v1475_v7  ;;  %v1745_v20 = vpop.f32.mrb[3].mxu0 }
 0x4a9   :  { %v1479_v21 = vfloor.f32 %v1476_v18 }
 0x4ab   :  { %v1868_v23 = vtrunc.f32 %v1479_v21  ;;  %v1262_v53 = vpop.f32.mrb[0].mxu1 }
 0x4ac   :  { %1266 = vst [vmem:[%s2793_s2] sm:$0xff] %v1262_v53  ;;  %v1710_v24 = vpop.f32.mrb[1].mxu1 }
 0x4ad   :  { %v1869_v25 = vcvt.f32.s32 %v1868_v23 }
 0x4af   :  { %1481 = vst [vmem:[%s2794_s3] sm:$0xff] %v1869_v25 }

</bundles_post_ra>
